<compile_context>
chip_gen: v7x
topology: tpu7x:2x2x1
jax: 0.10.0
libtpu: 0.0.40
codegen_flags: <defaults>
</compile_context>

<pallas_src>
import functools

import jax
import jax.numpy as jnp
from jax import lax
from jax.experimental import pallas as pl
from jax.experimental.pallas import tpu as pltpu


# ---------------------------- fused Pallas kernel ----------------------------

def _avgn_fused_kernel(patches_ref, aud_ref, cls_ref,
                       wimg_ref, bimg_ref, waud_ref, baud_ref,
                       gtok_ref, wq_ref, wkv_ref, wo_ref, wattn_a_ref,
                       wprob_ref, bprob_ref, wcls_ref, bcls_ref,
                       *out_refs, B, L, G, inv_tau, with_attn):
    f32 = jnp.float32
    bf16 = jnp.bfloat16
    out_ref = out_refs[0]
    dim = wq_ref.shape[0]

    # ---- 1. embed: folded backbone+proj linear, then F.normalize ----------
    def linear_norm(x, w_ref, b_ref):
        y = jnp.dot(x.astype(bf16), w_ref[...],
                    preferred_element_type=f32) + b_ref[...]
        ss = jnp.sum(y * y, axis=-1, keepdims=True)
        return y * lax.rsqrt(jnp.maximum(ss, 1e-24))     # == F.normalize

    img_n = linear_norm(patches_ref[...], wimg_ref, bimg_ref)   # [B*L, D]
    aud_n = linear_norm(aud_ref[...], waud_ref, baud_ref)       # [B, D]

    g = gtok_ref[...]                                            # [G, D] f32

    # ---- 2. visual grouping cross-attention (batched over B) --------------
    scale = 1.0 / (dim ** 0.5)
    q = jnp.dot(g.astype(bf16), wq_ref[...],
                preferred_element_type=f32)                      # [G, D]
    kv = jnp.dot(img_n.astype(bf16), wkv_ref[...],
                 preferred_element_type=f32)                     # [B*L, 2D]
    k = kv[:, :dim]
    v = kv[:, dim:]
    s = lax.dot_general(q.astype(bf16), k.astype(bf16),
                        (((1,), (1,)), ((), ())),
                        preferred_element_type=f32) * scale      # [G, B*L]
    s = s.reshape(G, B, L)
    s = s - jnp.max(s, axis=-1, keepdims=True)
    p = jnp.exp(s)
    p = p * pl.reciprocal(jnp.sum(p, axis=-1, keepdims=True), approx=True)
    pb = jnp.transpose(p, (1, 0, 2))                             # [B, G, L]
    v3 = v.reshape(B, L, dim)
    ctx = jnp.einsum('bgl,bld->bgd', pb.astype(bf16), v3.astype(bf16),
                     preferred_element_type=f32)                 # [B, G, D]
    xv_out = g[None, :, :] + jnp.dot(
        ctx.reshape(B * G, dim).astype(bf16), wo_ref[...],
        preferred_element_type=f32).reshape(B, G, dim)           # [B, G, D]

    # ---- 3. audio grouping: single valid key => softmax == 1 --------------
    # out = g + (xa @ Wv_a) @ Wo_a, with Wv_a @ Wo_a folded offline.
    aud_ctx = jnp.dot(aud_n.astype(bf16), wattn_a_ref[...],
                      preferred_element_type=f32)                # [B, D]
    xa_out = g[None, :, :] + aud_ctx[:, None, :]                 # [B, G, D]

    # ---- 4. class-token selection: one-hot weighted sum (no gather) -------
    aud_sel = jnp.sum(cls_ref[...][:, :, None] * xa_out, axis=1)  # [B, D]

    # ---- 5. similarity / spatial-max logits / Savl diagonal ---------------
    sim = lax.dot_general(img_n.astype(bf16), aud_sel.astype(bf16),
                          (((1,), (1,)), ((), ())),
                          preferred_element_type=f32) * inv_tau   # [B*L, B]
    sim3 = sim.reshape(B, L, B)                                   # [n, hw, m]
    logits = jnp.max(sim3, axis=1)                                # [B, B]
    eye = (lax.broadcasted_iota(jnp.int32, (B, 1, B), 0) ==
           lax.broadcasted_iota(jnp.int32, (B, 1, B), 2))
    savl = jnp.sum(jnp.where(eye, sim3, 0.0), axis=-1)            # [B, L]

    # ---- 6. heads: lane-concatenated sigmoid prob heads + fc_cls ----------
    both = jnp.concatenate([xv_out.reshape(B * G, dim),
                            xa_out.reshape(B * G, dim)], axis=0)  # [2BG, D]
    y = jnp.dot(both.astype(bf16), wprob_ref[...],
                preferred_element_type=f32) + bprob_ref[...]      # [2BG, 2]
    yp = jax.nn.sigmoid(y)
    v_prob = yp[:B * G, 0:1].reshape(B, G)     # column 0 = fc_prob_v
    a_prob = yp[B * G:, 1:2].reshape(B, G)     # column 1 = fc_prob_a
    cls_out = jnp.dot(g.astype(bf16), wcls_ref[...],
                      preferred_element_type=f32) + bcls_ref[...]  # [G, C]

    # ---- 7. single lane-dense output slab (one unmasked store) ------------
    LANES = out_ref.shape[1]

    def lane_pad(x):
        pad = LANES - x.shape[1]
        if pad == 0:
            return x
        return jnp.concatenate([x, jnp.zeros((x.shape[0], pad), f32)], axis=1)

    slab = jnp.concatenate([lane_pad(logits), lane_pad(savl),
                            lane_pad(v_prob), lane_pad(a_prob),
                            lane_pad(cls_out)], axis=0)
    pad_rows = out_ref.shape[0] - slab.shape[0]
    if pad_rows:
        slab = jnp.concatenate(
            [slab, jnp.zeros((pad_rows, LANES), f32)], axis=0)
    out_ref[...] = slab

    if with_attn:                                 # eval mode only
        xv_ref, attn_ref = out_refs[1], out_refs[2]
        xv_ref[...] = xv_out.reshape(B * G, dim)
        attn_ref[...] = pb.reshape(B * G, L)


# ---------------------------- kernel wrapper ----------------------------

def pallas_avgn(prep, patches, audio_flat, cls_target, *, tau, B, L, G,
                with_attn=False):
    dim = prep["av_token"].shape[1]
    rows = 4 * B + G                     # logits + savl + v_prob + a_prob + cls
    ROWS = ((rows + 7) // 8) * 8

    kern = functools.partial(_avgn_fused_kernel, B=B, L=L, G=G,
                             inv_tau=1.0 / tau, with_attn=with_attn)

    out_shape = [jax.ShapeDtypeStruct((ROWS, 128), jnp.float32)]
    if with_attn:
        out_shape += [jax.ShapeDtypeStruct((B * G, dim), jnp.float32),
                      jax.ShapeDtypeStruct((B * G, L), jnp.float32)]

    args = (patches, audio_flat, cls_target,
            prep["w_img_eff"], prep["b_img_eff"],
            prep["w_aud_eff"], prep["b_aud_eff"],
            prep["av_token"], prep["wq_v"], prep["wkv_v"], prep["wo_v"],
            prep["w_aud_attn"], prep["w_prob"], prep["b_prob"],
            prep["w_cls"], prep["b_cls"])

    vmem = lambda: pl.BlockSpec(memory_space=pltpu.MemorySpace.VMEM)
    return pl.pallas_call(
        kern,
        in_specs=[vmem() for _ in args],
        out_specs=tuple(vmem() for _ in out_shape),
        out_shape=tuple(out_shape),
    )(*args)


# ---------------------------- plain-JAX glue ----------------------------

def cross_entropy(logits, labels):
    logp = logits - jax.scipy.special.logsumexp(logits, axis=-1, keepdims=True)
    return -jnp.mean(jnp.take_along_axis(logp, labels[:, None], axis=-1))


def bce(prob, target):
    p = jnp.clip(prob, 1e-7, 1.0 - 1e-7)
    return -jnp.mean(target * jnp.log(p) + (1.0 - target) * jnp.log(1.0 - p))


def prepare_params(p):
    """One-time layout plumbing: fold back-to-back linears, collapse the
    single-key audio attention, lane-concatenate the prob heads, cast matmul
    weights to bf16 (biases stay f32)."""
    bf = lambda w: w.astype(jnp.bfloat16)
    # backbone-standin linear followed (no nonlinearity) by proj -> fold.
    w_img_eff = p["img_bb_w"] @ p["img_proj_w"]
    b_img_eff = p["img_bb_b"] @ p["img_proj_w"] + p["img_proj_b"]
    w_aud_eff = p["aud_bb_w"] @ p["aud_proj_w"]
    b_aud_eff = p["aud_bb_b"] @ p["aud_proj_w"] + p["aud_proj_b"]
    return {
        "w_img_eff": bf(w_img_eff), "b_img_eff": b_img_eff.reshape(1, -1),
        "w_aud_eff": bf(w_aud_eff), "b_aud_eff": b_aud_eff.reshape(1, -1),
        "av_token": p["av_token"],
        "wq_v": bf(p["vis_wq"]),
        "wkv_v": bf(jnp.concatenate([p["vis_wk"], p["vis_wv"]], axis=1)),
        "wo_v": bf(p["vis_wo"]),
        # audio grouping attention over a single token: softmax == 1, so the
        # whole block reduces to x @ (Wv_a @ Wo_a); wq_a / wk_a drop out.
        "w_aud_attn": bf(p["aud_wv"] @ p["aud_wo"]),
        # prob heads lane-concatenated: column 0 = fc_prob_v, column 1 = fc_prob_a
        "w_prob": bf(jnp.concatenate([p["fc_prob_v_w"], p["fc_prob_a_w"]], axis=1)),
        "b_prob": jnp.concatenate([p["fc_prob_v_b"], p["fc_prob_a_b"]]).reshape(1, 2),
        "w_cls": bf(p["fc_cls_w"]), "b_cls": p["fc_cls_b"].reshape(1, -1),
    }


def avgn_forward(prep, image, audio, cls_target, tau, num_class, mode="train"):
    B, Ci, Hi, Wi = image.shape
    L, G = 49, num_class
    cls_target_v = cls_target
    cls_target_a = cls_target

    # TODO(synk): pretrained ResNet-18 image/audio backbones are replaced by a
    # deterministic patch-embed / flatten + (folded) linear stand-in.
    ph, pw = Hi // 7, Wi // 7
    patches = (image.reshape(B, Ci, 7, ph, 7, pw)
                    .transpose(0, 2, 4, 1, 3, 5)
                    .reshape(B * 49, Ci * ph * pw))          # [B*49, Pc]
    audio_flat = audio.reshape(B, -1)                        # [B, Ac]

    # TODO(synk): ModalityTrans (multi-layer grouping transformer) is not
    # defined in this file; replaced by a single cross-attention grouping
    # block (visual) and its analytic single-token collapse (audio).
    outs = pallas_avgn(prep, patches, audio_flat, cls_target_v,
                       tau=tau, B=B, L=L, G=G,
                       with_attn=(mode != "train"))
    slab = outs[0]
    logits = slab[0:B, 0:B]                          # spatial-max similarity
    savl = slab[B:2 * B, 0:L]                        # diagonal Slogits[b, b]
    v_pred_prob = slab[2 * B:3 * B, 0:G]
    a_pred_prob = slab[3 * B:4 * B, 0:G]
    av_cls_prob = slab[4 * B:4 * B + G, 0:num_class]

    Savl = savl.reshape(B, 7, 7)
    labels = jnp.arange(B)
    loss = cross_entropy(logits, labels) + cross_entropy(logits.T, labels)

    if mode == "train":
        cls_token_loss = cross_entropy(av_cls_prob, jnp.arange(num_class))
        cls_pred_loss = (bce(v_pred_prob, cls_target_v) +
                         bce(a_pred_prob, cls_target_a))
        return loss, Savl, cls_token_loss, cls_pred_loss
    else:
        dim = prep["av_token"].shape[1]
        xv_out = outs[1].reshape(B, G, dim)
        xv_attn = outs[2].reshape(B, G, L)
        xa_attn = jnp.ones((B, G, 1), jnp.float32)   # single key => softmax == 1
        return Savl, xv_attn, xa_attn, xv_out


# ------------------------------- main -----------------------------------

if __name__ == "__main__":
    B, dim, num_class, tau = 2, 32, 4, 0.03
    key = jax.random.PRNGKey(0)
    ks = list(jax.random.split(key, 24))

    def tn(k, shape, std):
        return (std * jax.random.truncated_normal(k, -2.0, 2.0, shape)).astype(jnp.float32)

    params = {
        # backbone stand-ins
        "img_bb_w": tn(ks[0], (48, 512), 0.05),  "img_bb_b": jnp.zeros((512,), jnp.float32),
        "aud_bb_w": tn(ks[1], (256, 512), 0.05), "aud_bb_b": jnp.zeros((512,), jnp.float32),
        # img_proj Conv2d(512, dim, 1x1) weight stored as [512, dim]
        "img_proj_w": tn(ks[2], (512, dim), 0.05), "img_proj_b": jnp.zeros((dim,), jnp.float32),
        # aud_proj Linear(512, dim)  (trunc_normal std=0.01 per module init)
        "aud_proj_w": tn(ks[3], (512, dim), 0.01), "aud_proj_b": jnp.zeros((dim,), jnp.float32),
        # av_token = zeros per nn.Parameter(torch.zeros(num_class, dim))
        "av_token": jnp.zeros((num_class, dim), jnp.float32),
        # grouping-attention stand-in weights
        "vis_wq": tn(ks[4], (dim, dim), 0.02), "vis_wk": tn(ks[5], (dim, dim), 0.02),
        "vis_wv": tn(ks[6], (dim, dim), 0.02), "vis_wo": tn(ks[7], (dim, dim), 0.02),
        "aud_wq": tn(ks[8], (dim, dim), 0.02), "aud_wk": tn(ks[9], (dim, dim), 0.02),
        "aud_wv": tn(ks[10], (dim, dim), 0.02), "aud_wo": tn(ks[11], (dim, dim), 0.02),
        # heads (trunc_normal std=0.02, zero bias per _init_weights)
        "fc_prob_a_w": tn(ks[12], (dim, 1), 0.02), "fc_prob_a_b": jnp.zeros((1,), jnp.float32),
        "fc_prob_v_w": tn(ks[13], (dim, 1), 0.02), "fc_prob_v_b": jnp.zeros((1,), jnp.float32),
        "fc_cls_w": tn(ks[14], (dim, num_class), 0.02),
        "fc_cls_b": jnp.zeros((num_class,), jnp.float32),
    }

    image = jax.random.normal(ks[20], (B, 3, 28, 28), jnp.float32)   # NCHW image
    audio = jax.random.normal(ks[21], (B, 1, 16, 16), jnp.float32)   # NCHW spectrogram
    cls_target = jax.nn.one_hot(jnp.array([1, 3]), num_class, dtype=jnp.float32)

    prep = prepare_params(params)
    fwd = jax.jit(functools.partial(avgn_forward, tau=tau,
                                    num_class=num_class, mode="train"))
    outs = fwd(prep, image, audio, cls_target)
    outs = jax.block_until_ready(outs)
    print("KERNEL_OK")
</pallas_src>

<mosaic_0001>
module attributes {stable_mosaic.version = 11 : i64} {
  func.func @_avgn_fused_kernel(%arg0: memref<98x48xf32, #tpu.memory_space<vmem>>, %arg1: memref<2x256xf32, #tpu.memory_space<vmem>>, %arg2: memref<2x4xf32, #tpu.memory_space<vmem>>, %arg3: memref<48x32xbf16, #tpu.memory_space<vmem>>, %arg4: memref<1x32xf32, #tpu.memory_space<vmem>>, %arg5: memref<256x32xbf16, #tpu.memory_space<vmem>>, %arg6: memref<1x32xf32, #tpu.memory_space<vmem>>, %arg7: memref<4x32xf32, #tpu.memory_space<vmem>>, %arg8: memref<32x32xbf16, #tpu.memory_space<vmem>>, %arg9: memref<32x64xbf16, #tpu.memory_space<vmem>>, %arg10: memref<32x32xbf16, #tpu.memory_space<vmem>>, %arg11: memref<32x32xbf16, #tpu.memory_space<vmem>>, %arg12: memref<32x2xbf16, #tpu.memory_space<vmem>>, %arg13: memref<1x2xf32, #tpu.memory_space<vmem>>, %arg14: memref<32x4xbf16, #tpu.memory_space<vmem>>, %arg15: memref<1x4xf32, #tpu.memory_space<vmem>>, %arg16: memref<16x128xf32, #tpu.memory_space<vmem>>) attributes {dimension_semantics = [], scalar_prefetch = 0 : i64, scratch_operands = 0 : i64, tpu.core_type = #tpu.core_type<tc>} {
    %c0 = arith.constant 0 : index
    %c0_0 = arith.constant 0 : index
    %0 = vector.load %arg0[%c0, %c0_0] : memref<98x48xf32, #tpu.memory_space<vmem>>, vector<98x48xf32>
    %1 = arith.truncf %0 : vector<98x48xf32> to vector<98x48xbf16>
    %c0_1 = arith.constant 0 : index
    %c0_2 = arith.constant 0 : index
    %2 = vector.load %arg3[%c0_1, %c0_2] : memref<48x32xbf16, #tpu.memory_space<vmem>>, vector<48x32xbf16>
    %cst = arith.constant dense<0.000000e+00> : vector<98x32xf32>
    %3 = tpu.matmul %1, %2, %cst {dimension_numbers = #tpu.dot_dimension_numbers<[1], [0], [0], [1], [0, 0, 1, 1], [], []>} : vector<98x48xbf16>, vector<48x32xbf16>, vector<98x32xf32> -> vector<98x32xf32>
    %c0_3 = arith.constant 0 : index
    %c0_4 = arith.constant 0 : index
    %4 = vector.load %arg4[%c0_3, %c0_4] : memref<1x32xf32, #tpu.memory_space<vmem>>, vector<1x32xf32>
    %5 = vector.broadcast %4 : vector<1x32xf32> to vector<98x32xf32>
    %6 = arith.addf %3, %5 : vector<98x32xf32>
    %7 = arith.mulf %6, %6 : vector<98x32xf32>
    %cst_5 = arith.constant dense<0.000000e+00> : vector<98xf32>
    %8 = vector.multi_reduction <add>, %7, %cst_5 [1] : vector<98x32xf32> to vector<98xf32>
    %9 = vector.shape_cast %8 : vector<98xf32> to vector<98x1xf32>
    %cst_6 = arith.constant 1.000000e-24 : f32
    %10 = vector.broadcast %cst_6 : f32 to vector<98x1xf32>
    %11 = arith.maximumf %9, %10 : vector<98x1xf32>
    %12 = math.rsqrt %11 : vector<98x1xf32>
    %13 = vector.broadcast %12 : vector<98x1xf32> to vector<98x32xf32>
    %14 = arith.mulf %6, %13 : vector<98x32xf32>
    %c0_7 = arith.constant 0 : index
    %c0_8 = arith.constant 0 : index
    %15 = vector.load %arg1[%c0_7, %c0_8] : memref<2x256xf32, #tpu.memory_space<vmem>>, vector<2x256xf32>
    %16 = arith.truncf %15 : vector<2x256xf32> to vector<2x256xbf16>
    %c0_9 = arith.constant 0 : index
    %c0_10 = arith.constant 0 : index
    %17 = vector.load %arg5[%c0_9, %c0_10] : memref<256x32xbf16, #tpu.memory_space<vmem>>, vector<256x32xbf16>
    %cst_11 = arith.constant dense<0.000000e+00> : vector<2x32xf32>
    %18 = tpu.matmul %16, %17, %cst_11 {dimension_numbers = #tpu.dot_dimension_numbers<[1], [0], [0], [1], [0, 0, 1, 1], [], []>} : vector<2x256xbf16>, vector<256x32xbf16>, vector<2x32xf32> -> vector<2x32xf32>
    %c0_12 = arith.constant 0 : index
    %c0_13 = arith.constant 0 : index
    %19 = vector.load %arg6[%c0_12, %c0_13] : memref<1x32xf32, #tpu.memory_space<vmem>>, vector<1x32xf32>
    %20 = vector.broadcast %19 : vector<1x32xf32> to vector<2x32xf32>
    %21 = arith.addf %18, %20 : vector<2x32xf32>
    %22 = arith.mulf %21, %21 : vector<2x32xf32>
    %cst_14 = arith.constant dense<0.000000e+00> : vector<2xf32>
    %23 = vector.multi_reduction <add>, %22, %cst_14 [1] : vector<2x32xf32> to vector<2xf32>
    %24 = vector.shape_cast %23 : vector<2xf32> to vector<2x1xf32>
    %cst_15 = arith.constant 1.000000e-24 : f32
    %25 = vector.broadcast %cst_15 : f32 to vector<2x1xf32>
    %26 = arith.maximumf %24, %25 : vector<2x1xf32>
    %27 = math.rsqrt %26 : vector<2x1xf32>
    %28 = vector.broadcast %27 : vector<2x1xf32> to vector<2x32xf32>
    %29 = arith.mulf %21, %28 : vector<2x32xf32>
    %c0_16 = arith.constant 0 : index
    %c0_17 = arith.constant 0 : index
    %30 = vector.load %arg7[%c0_16, %c0_17] : memref<4x32xf32, #tpu.memory_space<vmem>>, vector<4x32xf32>
    %31 = arith.truncf %30 : vector<4x32xf32> to vector<4x32xbf16>
    %c0_18 = arith.constant 0 : index
    %c0_19 = arith.constant 0 : index
    %32 = vector.load %arg8[%c0_18, %c0_19] : memref<32x32xbf16, #tpu.memory_space<vmem>>, vector<32x32xbf16>
    %cst_20 = arith.constant dense<0.000000e+00> : vector<4x32xf32>
    %33 = tpu.matmul %31, %32, %cst_20 {dimension_numbers = #tpu.dot_dimension_numbers<[1], [0], [0], [1], [0, 0, 1, 1], [], []>} : vector<4x32xbf16>, vector<32x32xbf16>, vector<4x32xf32> -> vector<4x32xf32>
    %34 = arith.truncf %14 : vector<98x32xf32> to vector<98x32xbf16>
    %c0_21 = arith.constant 0 : index
    %c0_22 = arith.constant 0 : index
    %35 = vector.load %arg9[%c0_21, %c0_22] : memref<32x64xbf16, #tpu.memory_space<vmem>>, vector<32x64xbf16>
    %cst_23 = arith.constant dense<0.000000e+00> : vector<98x64xf32>
    %36 = tpu.matmul %34, %35, %cst_23 {dimension_numbers = #tpu.dot_dimension_numbers<[1], [0], [0], [1], [0, 0, 1, 1], [], []>} : vector<98x32xbf16>, vector<32x64xbf16>, vector<98x64xf32> -> vector<98x64xf32>
    %37 = vector.extract_strided_slice %36 {offsets = [0, 0], sizes = [98, 32], strides = [1, 1]} : vector<98x64xf32> to vector<98x32xf32>
    %38 = vector.extract_strided_slice %36 {offsets = [0, 32], sizes = [98, 32], strides = [1, 1]} : vector<98x64xf32> to vector<98x32xf32>
    %39 = arith.truncf %33 : vector<4x32xf32> to vector<4x32xbf16>
    %40 = arith.truncf %37 : vector<98x32xf32> to vector<98x32xbf16>
    %cst_24 = arith.constant dense<0.000000e+00> : vector<4x98xf32>
    %41 = tpu.matmul %39, %40, %cst_24 {dimension_numbers = #tpu.dot_dimension_numbers<[1], [1], [0], [0], [0, 0, 1, 0], [], []>} : vector<4x32xbf16>, vector<98x32xbf16>, vector<4x98xf32> -> vector<4x98xf32>
    %cst_25 = arith.constant 0.176776692 : f32
    %42 = vector.broadcast %cst_25 : f32 to vector<4x98xf32>
    %43 = arith.mulf %41, %42 : vector<4x98xf32>
    %44 = vector.shape_cast %43 : vector<4x98xf32> to vector<4x2x49xf32>
    %cst_26 = arith.constant dense<0xFF800000> : vector<4x2xf32>
    %45 = vector.multi_reduction <maximumf>, %44, %cst_26 [2] : vector<4x2x49xf32> to vector<4x2xf32>
    %46 = vector.shape_cast %45 : vector<4x2xf32> to vector<4x2x1xf32>
    %47 = vector.broadcast %46 : vector<4x2x1xf32> to vector<4x2x49xf32>
    %48 = arith.subf %44, %47 : vector<4x2x49xf32>
    %49 = math.exp %48 : vector<4x2x49xf32>
    %cst_27 = arith.constant dense<0.000000e+00> : vector<4x2xf32>
    %50 = vector.multi_reduction <add>, %49, %cst_27 [2] : vector<4x2x49xf32> to vector<4x2xf32>
    %51 = vector.shape_cast %50 : vector<4x2xf32> to vector<4x2x1xf32>
    %52 = tpu.reciprocal %51 {approx = true} : vector<4x2x1xf32> -> vector<4x2x1xf32>
    %53 = vector.broadcast %52 : vector<4x2x1xf32> to vector<4x2x49xf32>
    %54 = arith.mulf %49, %53 : vector<4x2x49xf32>
    %55 = tpu.transpose %54, [1, 0, 2] : vector<4x2x49xf32> -> vector<2x4x49xf32>
    %56 = vector.shape_cast %38 : vector<98x32xf32> to vector<2x49x32xf32>
    %57 = arith.truncf %55 : vector<2x4x49xf32> to vector<2x4x49xbf16>
    %58 = arith.truncf %56 : vector<2x49x32xf32> to vector<2x49x32xbf16>
    "tpu.trace_start"() <{level = 10 : i32, message = "bgl,bld->bgd"}> : () -> ()
    %cst_28 = arith.constant dense<0.000000e+00> : vector<2x4x32xf32>
    %59 = tpu.matmul %57, %58, %cst_28 {dimension_numbers = #tpu.dot_dimension_numbers<[2], [1], [1], [2], [0, 0, 0, 1, 1, 2], [0], [0]>} : vector<2x4x49xbf16>, vector<2x49x32xbf16>, vector<2x4x32xf32> -> vector<2x4x32xf32>
    "tpu.trace_stop"() : () -> ()
    %60 = vector.shape_cast %30 : vector<4x32xf32> to vector<1x4x32xf32>
    %61 = vector.shape_cast %59 : vector<2x4x32xf32> to vector<8x32xf32>
    %62 = arith.truncf %61 : vector<8x32xf32> to vector<8x32xbf16>
    %c0_29 = arith.constant 0 : index
    %c0_30 = arith.constant 0 : index
    %63 = vector.load %arg10[%c0_29, %c0_30] : memref<32x32xbf16, #tpu.memory_space<vmem>>, vector<32x32xbf16>
    %cst_31 = arith.constant dense<0.000000e+00> : vector<8x32xf32>
    %64 = tpu.matmul %62, %63, %cst_31 {dimension_numbers = #tpu.dot_dimension_numbers<[1], [0], [0], [1], [0, 0, 1, 1], [], []>} : vector<8x32xbf16>, vector<32x32xbf16>, vector<8x32xf32> -> vector<8x32xf32>
    %65 = vector.shape_cast %64 : vector<8x32xf32> to vector<2x4x32xf32>
    %66 = vector.broadcast %60 : vector<1x4x32xf32> to vector<2x4x32xf32>
    %67 = arith.addf %66, %65 : vector<2x4x32xf32>
    %68 = arith.truncf %29 : vector<2x32xf32> to vector<2x32xbf16>
    %c0_32 = arith.constant 0 : index
    %c0_33 = arith.constant 0 : index
    %69 = vector.load %arg11[%c0_32, %c0_33] : memref<32x32xbf16, #tpu.memory_space<vmem>>, vector<32x32xbf16>
    %cst_34 = arith.constant dense<0.000000e+00> : vector<2x32xf32>
    %70 = tpu.matmul %68, %69, %cst_34 {dimension_numbers = #tpu.dot_dimension_numbers<[1], [0], [0], [1], [0, 0, 1, 1], [], []>} : vector<2x32xbf16>, vector<32x32xbf16>, vector<2x32xf32> -> vector<2x32xf32>
    %71 = vector.shape_cast %30 : vector<4x32xf32> to vector<1x4x32xf32>
    %72 = vector.shape_cast %70 : vector<2x32xf32> to vector<2x1x32xf32>
    %73 = vector.broadcast %71 : vector<1x4x32xf32> to vector<2x4x32xf32>
    %74 = vector.broadcast %72 : vector<2x1x32xf32> to vector<2x4x32xf32>
    %75 = arith.addf %73, %74 : vector<2x4x32xf32>
    %c0_35 = arith.constant 0 : index
    %c0_36 = arith.constant 0 : index
    %76 = vector.load %arg2[%c0_35, %c0_36] : memref<2x4xf32, #tpu.memory_space<vmem>>, vector<2x4xf32>
    %77 = vector.shape_cast %76 : vector<2x4xf32> to vector<2x4x1xf32>
    %78 = vector.broadcast %77 : vector<2x4x1xf32> to vector<2x4x32xf32>
    %79 = arith.mulf %78, %75 : vector<2x4x32xf32>
    %cst_37 = arith.constant dense<0.000000e+00> : vector<2x32xf32>
    %80 = vector.multi_reduction <add>, %79, %cst_37 [1] : vector<2x4x32xf32> to vector<2x32xf32>
    %81 = arith.truncf %14 : vector<98x32xf32> to vector<98x32xbf16>
    %82 = arith.truncf %80 : vector<2x32xf32> to vector<2x32xbf16>
    %cst_38 = arith.constant dense<0.000000e+00> : vector<98x2xf32>
    %83 = tpu.matmul %81, %82, %cst_38 {dimension_numbers = #tpu.dot_dimension_numbers<[1], [1], [0], [0], [0, 0, 1, 0], [], []>} : vector<98x32xbf16>, vector<2x32xbf16>, vector<98x2xf32> -> vector<98x2xf32>
    %cst_39 = arith.constant 33.3333321 : f32
    %84 = vector.broadcast %cst_39 : f32 to vector<98x2xf32>
    %85 = arith.mulf %83, %84 : vector<98x2xf32>
    %86 = vector.shape_cast %85 : vector<98x2xf32> to vector<2x49x2xf32>
    %cst_40 = arith.constant dense<0xFF800000> : vector<2x2xf32>
    %87 = vector.multi_reduction <maximumf>, %86, %cst_40 [1] : vector<2x49x2xf32> to vector<2x2xf32>
    %88 = tpu.iota {dimensions = array<i32: 0>} : vector<2x1x2xi32>
    %89 = tpu.iota {dimensions = array<i32: 2>} : vector<2x1x2xi32>
    %90 = arith.cmpi eq, %88, %89 : vector<2x1x2xi32>
    %cst_41 = arith.constant 0.000000e+00 : f32
    %91 = vector.shape_cast %90 : vector<2x1x2xi1> to vector<2x1x2xi1>
    %92 = vector.broadcast %91 : vector<2x1x2xi1> to vector<2x49x2xi1>
    %93 = vector.broadcast %cst_41 : f32 to vector<2x49x2xf32>
    %94 = arith.select %92, %86, %93 : vector<2x49x2xi1>, vector<2x49x2xf32>
    %cst_42 = arith.constant dense<0.000000e+00> : vector<2x49xf32>
    %95 = vector.multi_reduction <add>, %94, %cst_42 [2] : vector<2x49x2xf32> to vector<2x49xf32>
    %96 = vector.shape_cast %67 : vector<2x4x32xf32> to vector<8x32xf32>
    %97 = vector.shape_cast %75 : vector<2x4x32xf32> to vector<8x32xf32>
    %98 = tpu.concatenate %96, %97 in 0 : vector<8x32xf32>, vector<8x32xf32> -> vector<16x32xf32>
    %99 = arith.truncf %98 : vector<16x32xf32> to vector<16x32xbf16>
    %c0_43 = arith.constant 0 : index
    %c0_44 = arith.constant 0 : index
    %100 = vector.load %arg12[%c0_43, %c0_44] : memref<32x2xbf16, #tpu.memory_space<vmem>>, vector<32x2xbf16>
    %cst_45 = arith.constant dense<0.000000e+00> : vector<16x2xf32>
    %101 = tpu.matmul %99, %100, %cst_45 {dimension_numbers = #tpu.dot_dimension_numbers<[1], [0], [0], [1], [0, 0, 1, 1], [], []>} : vector<16x32xbf16>, vector<32x2xbf16>, vector<16x2xf32> -> vector<16x2xf32>
    %c0_46 = arith.constant 0 : index
    %c0_47 = arith.constant 0 : index
    %102 = vector.load %arg13[%c0_46, %c0_47] : memref<1x2xf32, #tpu.memory_space<vmem>>, vector<1x2xf32>
    %103 = vector.broadcast %102 : vector<1x2xf32> to vector<16x2xf32>
    %104 = arith.addf %101, %103 : vector<16x2xf32>
    %105 = arith.negf %104 : vector<16x2xf32>
    %106 = math.exp %105 : vector<16x2xf32>
    %cst_48 = arith.constant 1.000000e+00 : f32
    %107 = vector.broadcast %cst_48 : f32 to vector<16x2xf32>
    %108 = arith.addf %107, %106 : vector<16x2xf32>
    %109 = arith.divf %107, %108 : vector<16x2xf32>
    %110 = vector.extract_strided_slice %109 {offsets = [0, 0], sizes = [8, 1], strides = [1, 1]} : vector<16x2xf32> to vector<8x1xf32>
    %111 = vector.shape_cast %110 : vector<8x1xf32> to vector<2x4xf32>
    %112 = vector.extract_strided_slice %109 {offsets = [8, 1], sizes = [8, 1], strides = [1, 1]} : vector<16x2xf32> to vector<8x1xf32>
    %113 = vector.shape_cast %112 : vector<8x1xf32> to vector<2x4xf32>
    %114 = arith.truncf %30 : vector<4x32xf32> to vector<4x32xbf16>
    %c0_49 = arith.constant 0 : index
    %c0_50 = arith.constant 0 : index
    %115 = vector.load %arg14[%c0_49, %c0_50] : memref<32x4xbf16, #tpu.memory_space<vmem>>, vector<32x4xbf16>
    %cst_51 = arith.constant dense<0.000000e+00> : vector<4x4xf32>
    %116 = tpu.matmul %114, %115, %cst_51 {dimension_numbers = #tpu.dot_dimension_numbers<[1], [0], [0], [1], [0, 0, 1, 1], [], []>} : vector<4x32xbf16>, vector<32x4xbf16>, vector<4x4xf32> -> vector<4x4xf32>
    %c0_52 = arith.constant 0 : index
    %c0_53 = arith.constant 0 : index
    %117 = vector.load %arg15[%c0_52, %c0_53] : memref<1x4xf32, #tpu.memory_space<vmem>>, vector<1x4xf32>
    %118 = vector.broadcast %117 : vector<1x4xf32> to vector<4x4xf32>
    %119 = arith.addf %116, %118 : vector<4x4xf32>
    %cst_54 = arith.constant 0.000000e+00 : f32
    %120 = vector.broadcast %cst_54 : f32 to vector<2x126xf32>
    %121 = tpu.concatenate %87, %120 in 1 : vector<2x2xf32>, vector<2x126xf32> -> vector<2x128xf32>
    %cst_55 = arith.constant 0.000000e+00 : f32
    %122 = vector.broadcast %cst_55 : f32 to vector<2x79xf32>
    %123 = tpu.concatenate %95, %122 in 1 : vector<2x49xf32>, vector<2x79xf32> -> vector<2x128xf32>
    %cst_56 = arith.constant 0.000000e+00 : f32
    %124 = vector.broadcast %cst_56 : f32 to vector<2x124xf32>
    %125 = tpu.concatenate %111, %124 in 1 : vector<2x4xf32>, vector<2x124xf32> -> vector<2x128xf32>
    %cst_57 = arith.constant 0.000000e+00 : f32
    %126 = vector.broadcast %cst_57 : f32 to vector<2x124xf32>
    %127 = tpu.concatenate %113, %126 in 1 : vector<2x4xf32>, vector<2x124xf32> -> vector<2x128xf32>
    %cst_58 = arith.constant 0.000000e+00 : f32
    %128 = vector.broadcast %cst_58 : f32 to vector<4x124xf32>
    %129 = tpu.concatenate %119, %128 in 1 : vector<4x4xf32>, vector<4x124xf32> -> vector<4x128xf32>
    %130 = tpu.concatenate %121, %123, %125, %127, %129 in 0 : vector<2x128xf32>, vector<2x128xf32>, vector<2x128xf32>, vector<2x128xf32>, vector<4x128xf32> -> vector<12x128xf32>
    %cst_59 = arith.constant 0.000000e+00 : f32
    %131 = vector.broadcast %cst_59 : f32 to vector<4x128xf32>
    %132 = tpu.concatenate %130, %131 in 0 : vector<12x128xf32>, vector<4x128xf32> -> vector<16x128xf32>
    %c0_60 = arith.constant 0 : index
    %c0_61 = arith.constant 0 : index
    %133 = vector.load %arg16[%c0_60, %c0_61] : memref<16x128xf32, #tpu.memory_space<vmem>>, vector<16x128xf32>
    tpu.vector_store %arg16[%c0_60, %c0_61], %132 {strides = array<i32>} : memref<16x128xf32, #tpu.memory_space<vmem>>, vector<16x128xf32>,
    return
  }
}

</mosaic_0001>

<bundles_post_ra>
// kernel: avgn_forward.1
= control target key start
LH: loop header
LB: loop body
LE: loop exit
PB: predicated region body
PF: predicated region fallthrough
CT: control target
= control target key end

     0   :  { %v6192_v0 = vmov 0.0   ;;  %vm4697_vm0 = vmmov 0   ;;  %vm105_vm1 = vcmask 392192   ;;  %vm228_vm2 = vcmask 261120   ;;  %s4702_s18 = smov 96   ;;  %s6173_s3 = inlined_call_operand.vmem [shape: bf16[48,32], index: 3, kind: input, shape index: {}]   ;;  %s6174_s0 = inlined_call_operand.vmem [shape: f32[98,48], index: 0, kind: input, shape index: {}]   ;;  %s6175_s5 = inlined_call_operand.vmem [shape: bf16[256,32], index: 5, kind: input, shape index: {}]   ;;  %s6176_s4 = inlined_call_operand.vmem [shape: f32[1,32], index: 4, kind: input, shape index: {}]   ;;  %s6177_s1 = inlined_call_operand.vmem [shape: f32[2,256], index: 1, kind: input, shape index: {}]   ;;  %s6178_s8 = inlined_call_operand.vmem [shape: bf16[32,32], index: 8, kind: input, shape index: {}]   ;;  %s6179_s7 = inlined_call_operand.vmem [shape: f32[4,32], index: 7, kind: input, shape index: {}]   ;;  %s6180_s9 = inlined_call_operand.vmem [shape: bf16[32,64], index: 9, kind: input, shape index: {}]   ;;  %s6181_s6 = inlined_call_operand.vmem [shape: f32[1,32], index: 6, kind: input, shape index: {}]   ;;  %s6182_s11 = inlined_call_operand.vmem [shape: bf16[32,32], index: 11, kind: input, shape index: {}]   ;;  %s6183_s2 = inlined_call_operand.vmem [shape: f32[2,4], index: 2, kind: input, shape index: {}]   ;;  %s6184_s10 = inlined_call_operand.vmem [shape: bf16[32,32], index: 10, kind: input, shape index: {}]   ;;  %s6185_s12 = inlined_call_operand.vmem [shape: bf16[32,2], index: 12, kind: input, shape index: {}]   ;;  %s6186_s14 = inlined_call_operand.vmem [shape: bf16[32,4], index: 14, kind: input, shape index: {}]   ;;  %s6187_s13 = inlined_call_operand.vmem [shape: f32[1,2], index: 13, kind: input, shape index: {}]   ;;  %s6188_s15 = inlined_call_operand.vmem [shape: f32[1,4], index: 15, kind: input, shape index: {}]   ;;  %s6189_s16 = inlined_call_operand.vmem [shape: f32[16,128], index: 16, kind: output, shape index: {}]  }
   0x1   :  { %6207 = sst [smem:[#allocation15_spill]] %s6173_s3  ;;  %4419 = vmatprep.subr.bf16.mxu0 %v6192_v0  ;;  %4425 = vmatprep.mubr.msk.bf16.mxu0 %vm4697_vm0, %v6192_v0  ;;  %v54_v4 = vld [vmem:[%s6174_s0] sm:$0xff]  ;;  %v55_v5 = vld [vmem:[%s6174_s0 + $0x8] sm:$0xff]  ;;  %v56_v7 = vld [vmem:[%s6174_s0 + $0x10] sm:$0xff]  ;;  %vm265_vm3 = vcmask 254976   ;;  %vm806_vm4 = vcmask 394240  }
   0x2   :  { %s6208_s23 = sld [smem:[#allocation15_spill]]  ;;  %v67_v6 = vpack.c.bf16 %v55_v5, %v54_v4  ;;  %v57_v8 = vld [vmem:[%s6174_s0 + $0x18] sm:$0xff]  ;;  %v58_v10 = vld [vmem:[%s6174_s0 + $0x20] sm:$0xff]  ;;  %v59_v11 = vld [vmem:[%s6174_s0 + $0x28] sm:$0xff]  ;;  %vm2158_vm5 = vcmask 1040384   ;;  %vm2154_vm6 = vcmask 400384  }
   0x3   :  { %v68_v9 = vpack.c.bf16 %v57_v8, %v56_v7  ;;  %v69_v12 = vpack.c.bf16 %v59_v11, %v58_v10  ;;  %v60_v13 = vld [vmem:[%s6174_s0 + $0x30] sm:$0xff]  ;;  %v61_v14 = vld [vmem:[%s6174_s0 + $0x38] sm:$0xff]  ;;  %v62_v16 = vld [vmem:[%s6174_s0 + $0x40] sm:$0xff]  ;;  %vm2446_vm7 = vcmask 257024   ;;  %vm2467_vm8 = vcmask 1041409  }
   0x4   :  { %v70_v15 = vpack.c.bf16 %v61_v14, %v60_v13  ;;  %v63_v17 = vld [vmem:[%s6174_s0 + $0x48] sm:$0xff]  ;;  %v64_v19 = vld [vmem:[%s6174_s0 + $0x50] sm:$0xff]  ;;  %v65_v20 = vld [vmem:[%s6174_s0 + $0x58] sm:$0xff]  ;;  %vm3838_vm10 = vcmask 8192   ;;  %vm3827_vm11 = vcmask 15360   ;;  %vm4204_vm13 = vcmask 31744  }
   0x5   :  { %v71_v18 = vpack.c.bf16 %v63_v17, %v62_v16  ;;  %v72_v21 = vpack.c.bf16 %v65_v20, %v64_v19  ;;  %v66_v22 = vld [vmem:[%s6174_s0 + $0x60] sm:$0x3]  ;;  %v4617_v26 = vld [vmem:[%s6175_s5 + $0x48] sm:$0xff]   ;;  %v4619_v28 = vld [vmem:[%s6175_s5 + $0x50] sm:$0xff]   ;;  %vm4235_vm14 = vcmask 1043456   ;;  %vm4114_vm15 = vcmask 130112  }
   0x6   :  { %v73_v23 = vpack.c.bf16 %v66_v22, %v66_v22  ;;  %v4615_v24 = vld [vmem:[%s6175_s5 + $0x40] sm:$0xff]   ;;  %v4618_v27 = vld [vmem:[%s6175_s5 + $0x8] sm:$0xff]   ;;  %v4620_v29 = vld [vmem:[%s6175_s5 + $0x10] sm:$0xff]  }
   0x7   :  { %v4616_v25 = vld [vmem:[%s6175_s5] sm:$0xff]   ;;  %4347 = vmatprep.subr.bf16.mxu1 %v4615_v24  ;;  %v4621_v30 = vld [vmem:[%s6175_s5 + $0x58] sm:$0xff]   ;;  %v4625_v34 = vld [vmem:[%s6175_s5 + $0x68] sm:$0xff]  }
   0x8   :  { %v4612_v1 = vld [vmem:[%s6208_s23] sm:$0xff]   ;;  %v4613_v2 = vld [vmem:[%s6208_s23 + $0x8] sm:$0xff]   ;;  %v4614_v3 = vld [vmem:[%s6208_s23 + $0x10] sm:$0xff]   ;;  %4348 = vmatpush3.bf16.msra.mxu1 %v4616_v25 }
   0x9   :  { %4420 = vmatpush3.bf16.msra.mxu0 %v4612_v1  ;;  %4349 = vmatprep.subr.bf16.mxu1 %v4617_v26  ;;  %v4622_v31 = vld [vmem:[%s6175_s5 + $0x18] sm:$0xff]   ;;  %v4623_v32 = vld [vmem:[%s6175_s5 + $0x60] sm:$0xff]   ;;  %v4626_v35 = vld [vmem:[%s6175_s5 + $0x28] sm:$0xff]  }
   0xa   :  { %4421 = vmatprep.subr.bf16.mxu0 %v6192_v0  ;;  %v4624_v33 = vld [vmem:[%s6175_s5 + $0x20] sm:$0xff]   ;;  %v4627_v36 = vld [vmem:[%s6175_s5 + $0x70] sm:$0xff]   ;;  %v4629_v38 = vld [vmem:[%s6175_s5 + $0x78] sm:$0xff]  }
   0xb   :  { %v4628_v37 = vld [vmem:[%s6175_s5 + $0x30] sm:$0xff]   ;;  %v4630_v39 = vld [vmem:[%s6175_s5 + $0x38] sm:$0xff]   ;;  %v4917_v40 = vld [vmem:[%s6176_s4] ss:$0 sm:$0xff] }
   0xc   :  { %4350 = vmatpush3.bf16.msra.mxu1 %v4618_v27  ;;  %v4257_v61 = vld.sshfl [vmem:[%s6177_s1] sm:$0x33 pattern:$0x76325410]  ;;  %v4632_v16 = vld [vmem:[%s6178_s8 + $0x8] sm:$0xff]  }
   0xd   :  { %4422 = vmatpush3.bf16.msra.mxu0 %v4613_v2  ;;  %4351 = vmatprep.subr.bf16.mxu1 %v4619_v28  ;;  %v317_v2 = vcombine.high %v4257_v61, %v4257_v61  ;;  %v320_v8 = vpack.c.bf16 %v4257_v61, %v4257_v61  ;;  %v4631_v11 = vld [vmem:[%s6178_s8] sm:$0xff]  }
   0xe   :  { %4423 = vmatprep.subr.bf16.mxu0 %v6192_v0  ;;  %v4633_v27 = vld [vmem:[%s6180_s9] sm:$0xff]  }
   0xf   :  { %v321_v7 = vpack.c.bf16 %v317_v2, %v317_v2 }
  0x10   :  { %4352 = vmatpush3.bf16.msra.mxu1 %v4620_v29 }
  0x11   :  { %4424 = vmatpush3.bf16.msra.mxu0 %v4614_v3  ;;  %4353 = vmatprep.subr.bf16.mxu1 %v4621_v30 }
  0x12   :  { %4493 = vmatprep.subr.bf16.mxu0 %v6192_v0  ;;  %489 = vmatprep.mubr.bf16.mxu1 %v321_v7 }
  0x14   :  { %4426 = vmatmul.mubr.msk.bf16.vlgmr.msra.gmra.mrb[0].mxu0 %vm105_vm1, %v67_v6  ;;  %4354 = vmatpush3.bf16.msra.mxu1 %v4622_v31 }
  0x15   :  { %4429 = vmatprep.mubr.msk.bf16.mxu0 %vm4697_vm0, %v6192_v0  ;;  %4355 = vmatprep.subr.bf16.mxu1 %v4623_v32 }
  0x18   :  { %4356 = vmatpush3.bf16.msra.mxu1 %v4624_v33 }
  0x19   :  { %4357 = vmatprep.subr.bf16.mxu1 %v4625_v34  ;;  %v4634_v34 = vld [vmem:[%s6180_s9 + $0x8] sm:$0xff]   ;;  %s4699_s9 = smov 79  }
  0x1c   :  { %4430 = vmatmul.mubr.msk.bf16.gmra.mrb[4].mxu0 %vm105_vm1, %v68_v9  ;;  %4358 = vmatpush3.bf16.msra.mxu1 %v4626_v35 }
  0x1d   :  { %4433 = vmatprep.mubr.msk.bf16.mxu0 %vm4697_vm0, %v6192_v0  ;;  %4359 = vmatprep.subr.bf16.mxu1 %v4627_v36 }
  0x20   :  { %4360 = vmatpush3.bf16.msra.mxu1 %v4628_v37 }
  0x21   :  { %4361 = vmatprep.subr.bf16.mxu1 %v4629_v38 }
  0x24   :  { %4434 = vmatmul.mubr.msk.bf16.gmra.mrb[8].mxu0 %vm105_vm1, %v69_v12  ;;  %4362 = vmatpush3.bf16.msra.mxu1 %v4630_v39 }
  0x25   :  { %4437 = vmatprep.mubr.msk.bf16.mxu0 %vm4697_vm0, %v6192_v0  ;;  %4453 = vmatprep.subr.bf16.mxu1 %v6192_v0 }
  0x27   :  { %490 = vmatmul.mubr.bf16.vlgmr.msra.gmra.mrb[0].mxu1 %v320_v8 }
  0x28   :  { %4454 = vmatpush3.bf16.msra.mxu1 %v4631_v11  ;;  %4457 = vmatprep.mubr.msk.bf16.mxu1 %vm4697_vm0, %v6192_v0 }
  0x29   :  { %4455 = vmatprep.subr.bf16.mxu1 %v6192_v0 }
  0x2c   :  { %4438 = vmatmul.mubr.msk.bf16.gmra.mrb[12].mxu0 %vm105_vm1, %v70_v15  ;;  %4456 = vmatpush3.bf16.msra.mxu1 %v4632_v16 }
  0x2d   :  { %4441 = vmatprep.mubr.msk.bf16.mxu0 %vm4697_vm0, %v6192_v0  ;;  %4461 = vmatprep.subr.bf16.mxu1 %v6192_v0 }
  0x34   :  { %4442 = vmatmul.mubr.msk.bf16.gmra.mrb[16].mxu0 %vm105_vm1, %v71_v18 }
  0x35   :  { %4445 = vmatprep.mubr.msk.bf16.mxu0 %vm4697_vm0, %v6192_v0 }
  0x3c   :  { %4446 = vmatmul.mubr.msk.bf16.gmra.mrb[20].mxu0 %vm105_vm1, %v72_v21  ;;  %v504_v21 = vld [vmem:[%s6179_s7] sm:$0xf] }
  0x3d   :  { %4449 = vmatprep.mubr.msk.bf16.mxu0 %vm4697_vm0, %v6192_v0  ;;  %v4978_v22 = vpack.c.bf16 %v504_v21, %v504_v21 }
  0x3f   :  { %6209 = vst [vmem:[#allocation2_spill] sm:$0xff] %v4978_v22  ;;  %4458 = vmatmul.mubr.msk.bf16.vlgmr.msra.gmra.mrb[4].mxu1 %vm228_vm2, %v4978_v22 }
  0x40   :  { %4465 = vmatprep.mubr.msk.bf16.mxu1 %vm4697_vm0, %v6192_v0  ;;  %4462 = vmatpush3.bf16.msra.mxu1 %v4633_v27 }
  0x41   :  { %4463 = vmatprep.subr.bf16.mxu1 %v6192_v0 }
  0x44   :  { %4450 = vmatmul.mubr.msk.bf16.gmra.mrb[24].mxu0 %vm105_vm1, %v73_v23  ;;  %4464 = vmatpush3.bf16.msra.mxu1 %v4634_v34  ;;  %vm4128_vm1 = vcmask 261312  }
  0x45   :  { %4507 = vmatprep.mubr.msk.bf16.mxu0 %vm4697_vm0, %v6192_v0  ;;  %4535 = vmatprep.subr.bf16.mxu1 %v6192_v0 }
  0xe7   :  { %v161_v41 = vpop.f32.mrb[0].mxu0 }
  0xe8   :  { %v4920_v42 = vadd.f32 %v4917_v40, %v161_v41  ;;  %v4427_v43 = vpop.f32.mrb[1].mxu0 }
  0xe9   :  { %v164_v44 = vpop.f32.mrb[2].mxu0 }
  0xea   :  { %v4923_v45 = vadd.f32 %v4917_v40, %v164_v44  ;;  %v4428_v46 = vpop.f32.mrb[3].mxu0  ;;  %v215_v47 = vmul.f32 %v4920_v42, %v4920_v42 }
  0xec   :  { %v229_v48 = vsel %vm228_vm2, %v215_v47, 0.0  ;;  %v216_v49 = vmul.f32 %v4923_v45, %v4923_v45 }
  0xed   :  { %230 = vadd.xlane.f32.xlu0 %v229_v48 }
  0xee   :  { %v232_v53 = vsel %vm228_vm2, %v216_v49, 0.0 }
  0xef   :  { %v169_v50 = vpop.f32.mrb[4].mxu0 }
  0xf0   :  { %v4931_v51 = vadd.f32 %v4917_v40, %v169_v50  ;;  %v4431_v52 = vpop.f32.mrb[5].mxu0 }
  0xf1   :  { %233 = vadd.xlane.f32.xlu0 %v232_v53  ;;  %v172_v54 = vpop.f32.mrb[6].mxu0 }
  0xf2   :  { %v4935_v55 = vadd.f32 %v4917_v40, %v172_v54  ;;  %v4432_v56 = vpop.f32.mrb[7].mxu0  ;;  %v217_v57 = vmul.f32 %v4931_v51, %v4931_v51 }
  0xf4   :  { %v235_v58 = vsel %vm228_vm2, %v217_v57, 0.0  ;;  %v218_v59 = vmul.f32 %v4935_v55, %v4935_v55 }
  0xf5   :  { %236 = vadd.xlane.f32.xlu1 %v235_v58 }
  0xf6   :  { %v238_v1 = vsel %vm228_vm2, %v218_v59, 0.0 }
  0xf7   :  { %v177_v60 = vpop.f32.mrb[8].mxu0 }
  0xf8   :  { %v4946_v62 = vadd.f32 %v4917_v40, %v177_v60  ;;  %v4435_v63 = vpop.f32.mrb[9].mxu0 }
  0xf9   :  { %239 = vadd.xlane.f32.xlu1 %v238_v1  ;;  %v180_v3 = vpop.f32.mrb[10].mxu0 }
  0xfa   :  { %v4950_v4 = vadd.f32 %v4917_v40, %v180_v3  ;;  %v4436_v5 = vpop.f32.mrb[11].mxu0  ;;  %v219_v6 = vmul.f32 %v4946_v62, %v4946_v62 }
  0xfc   :  { %v241_v9 = vsel %vm228_vm2, %v219_v6, 0.0  ;;  %v220_v10 = vmul.f32 %v4950_v4, %v4950_v4 }
  0xfd   :  { %242 = vadd.xlane.f32.xlu0 %v241_v9 }
  0xfe   :  { %v244_v12 = vsel %vm228_vm2, %v220_v10, 0.0 }
  0xff   :  { %245 = vadd.xlane.f32.xlu1 %v244_v12  ;;  %v185_v13 = vpop.f32.mrb[12].mxu0 }
 0x100   :  { %v4965_v14 = vadd.f32 %v4917_v40, %v185_v13  ;;  %v4439_v15 = vpop.f32.mrb[13].mxu0 }
 0x101   :  { %v188_v17 = vpop.f32.mrb[14].mxu0 }
 0x102   :  { %v4971_v18 = vadd.f32 %v4917_v40, %v188_v17  ;;  %v4440_v19 = vpop.f32.mrb[15].mxu0  ;;  %v221_v20 = vmul.f32 %v4965_v14, %v4965_v14 }
 0x104   :  { %v247_v23 = vsel %vm228_vm2, %v221_v20, 0.0  ;;  %v222_v24 = vmul.f32 %v4971_v18, %v4971_v18 }
 0x105   :  { %248 = vadd.xlane.f32.xlu0 %v247_v23 }
 0x106   :  { %v250_v25 = vsel %vm228_vm2, %v222_v24, 0.0 }
 0x107   :  { %251 = vadd.xlane.f32.xlu1 %v250_v25  ;;  %v193_v26 = vpop.f32.mrb[16].mxu0 }
 0x108   :  { %v4993_v28 = vadd.f32 %v4917_v40, %v193_v26  ;;  %v4443_v29 = vpop.f32.mrb[17].mxu0 }
 0x109   :  { %v196_v30 = vpop.f32.mrb[18].mxu0 }
 0x10a   :  { %v4996_v31 = vadd.f32 %v4917_v40, %v196_v30  ;;  %v4444_v32 = vpop.f32.mrb[19].mxu0  ;;  %v223_v33 = vmul.f32 %v4993_v28, %v4993_v28 }
 0x10c   :  { %v253_v35 = vsel %vm228_vm2, %v223_v33, 0.0  ;;  %v224_v36 = vmul.f32 %v4996_v31, %v4996_v31 }
 0x10d   :  { %254 = vadd.xlane.f32.xlu0 %v253_v35 }
 0x10e   :  { %v256_v37 = vsel %vm228_vm2, %v224_v36, 0.0 }
 0x10f   :  { %257 = vadd.xlane.f32.xlu1 %v256_v37  ;;  %v201_v38 = vpop.f32.mrb[20].mxu0 }
 0x110   :  { %v5010_v39 = vadd.f32 %v4917_v40, %v201_v38  ;;  %v4447_v41 = vpop.f32.mrb[21].mxu0 }
 0x111   :  { %v204_v43 = vpop.f32.mrb[22].mxu0 }
 0x112   :  { %v5013_v44 = vadd.f32 %v4917_v40, %v204_v43  ;;  %v4448_v46 = vpop.f32.mrb[23].mxu0  ;;  %v225_v47 = vmul.f32 %v5010_v39, %v5010_v39 }
 0x114   :  { %v259_v48 = vsel %vm228_vm2, %v225_v47, 0.0  ;;  %v226_v49 = vmul.f32 %v5013_v44, %v5013_v44 }
 0x115   :  { %260 = vadd.xlane.f32.xlu0 %v259_v48 }
 0x116   :  { %v262_v50 = vsel %vm228_vm2, %v226_v49, 0.0 }
 0x117   :  { %263 = vadd.xlane.f32.xlu1 %v262_v50  ;;  %v209_v52 = vpop.f32.mrb[24].mxu0 }
 0x118   :  { %v5022_v53 = vadd.f32 %v4917_v40, %v209_v52  ;;  %v4451_v54 = vpop.f32.mrb[25].mxu0 }
 0x119   :  { %v212_v56 = vpop.f32.mrb[26].mxu0 }
 0x11a   :  { %v227_v57 = vmul.f32 %v5022_v53, %v5022_v53  ;;  %v4452_v58 = vpop.f32.mrb[27].mxu0 }
 0x11c   :  { %v266_v59 = vsel %vm265_vm3, %v227_v57, 0.0 }
 0x11d   :  { %267 = vadd.xlane.f32.xlu0 %v266_v59 }
 0x17a   :  { %v231_v60 = vpop.xlane.xlu0 %230 }
 0x17b   :  { %v269_v61 = vmax.f32 %v231_v60, 1e-24 }
 0x17d   :  { %4643 = vrsqrt.f32 %v269_v61 }
 0x17e   :  { %v234_v63 = vpop.xlane.xlu0 %233 }
 0x17f   :  { %v270_v1 = vmax.f32 %v234_v63, 1e-24 }
 0x181   :  { %4645 = vrsqrt.f32 %v270_v1 }
 0x182   :  { %v237_v2 = vpop.xlane.xlu1 %236 }
 0x183   :  { %v271_v3 = vmax.f32 %v237_v2, 1e-24 }
 0x185   :  { %4647 = vrsqrt.f32 %v271_v3 }
 0x186   :  { %v240_v40 = vpop.xlane.xlu1 %239 }
 0x187   :  { %v272_v5 = vmax.f32 %v240_v40, 1e-24  ;;  %v4644_v6 = vpop.eup %4643 }
 0x188   :  { %v295_v10 = vmul.f32 %v4644_v6, %v4920_v42 }
 0x189   :  { %4649 = vrsqrt.f32 %v272_v5  ;;  %v4698_v5 = vmov 1966171168  }
 0x18a   :  { %v243_v7 = vpop.xlane.xlu0 %242  ;;  %v891_v6 = vunpack.c.l.s4 %v4698_v5 }
 0x18b   :  { %v4646_v8 = vpop.eup %4645  ;;  %v273_v9 = vmax.f32 %v243_v7, 1e-24 }
 0x18c   :  { %v296_v11 = vmul.f32 %v4646_v8, %v4923_v45  ;;  %v246_v12 = vpop.xlane.xlu1 %245  ;;  %v892_v8 = vunpack.c.0.s8 %v891_v6 }
 0x18d   :  { %v274_v13 = vmax.f32 %v246_v12, 1e-24  ;;  %4651 = vrsqrt.f32 %v273_v9 }
 0x18e   :  { %v5029_v15 = vpack.c.bf16 %v296_v11, %v295_v10 }
 0x18f   :  { %4653 = vrsqrt.f32 %v274_v13  ;;  %v4648_v16 = vpop.eup %4647 }
 0x190   :  { %6210 = vst [vmem:[#allocation3_spill] sm:$0xff] %v5029_v15  ;;  %4466 = vmatmul.mubr.msk.bf16.vlgmr.msra.gmra.mrb[8].mxu1 %vm228_vm2, %v5029_v15  ;;  %v297_v42 = vmul.f32 %v4648_v16, %v4931_v51 }
 0x191   :  { %4469 = vmatprep.mubr.msk.bf16.mxu1 %vm4697_vm0, %v6192_v0 }
 0x192   :  { %v249_v17 = vpop.xlane.xlu0 %248 }
 0x193   :  { %v4650_v19 = vpop.eup %4649  ;;  %v275_v20 = vmax.f32 %v249_v17, 1e-24 }
 0x194   :  { %v252_v21 = vpop.xlane.xlu1 %251  ;;  %v298_v45 = vmul.f32 %v4650_v19, %v4935_v55 }
 0x195   :  { %v276_v23 = vmax.f32 %v252_v21, 1e-24  ;;  %4655 = vrsqrt.f32 %v275_v20 }
 0x196   :  { %v5037_v24 = vpack.c.bf16 %v298_v45, %v297_v42 }
 0x197   :  { %4657 = vrsqrt.f32 %v276_v23  ;;  %v4652_v25 = vpop.eup %4651 }
 0x198   :  { %6211 = vst [vmem:[#allocation4_spill] sm:$0xff] %v5037_v24  ;;  %4470 = vmatmul.mubr.msk.bf16.gmra.mrb[12].mxu1 %vm228_vm2, %v5037_v24  ;;  %v299_v55 = vmul.f32 %v4652_v25, %v4946_v62 }
 0x199   :  { %v4654_v26 = vpop.eup %4653  ;;  %4473 = vmatprep.mubr.msk.bf16.mxu1 %vm4697_vm0, %v6192_v0 }
 0x19a   :  { %v255_v27 = vpop.xlane.xlu0 %254  ;;  %v300_v29 = vmul.f32 %v4654_v26, %v4950_v4 }
 0x19b   :  { %v277_v30 = vmax.f32 %v255_v27, 1e-24 }
 0x19c   :  { %v258_v51 = vpop.xlane.xlu1 %257  ;;  %v5045_v33 = vpack.c.bf16 %v300_v29, %v299_v55 }
 0x19d   :  { %v278_v32 = vmax.f32 %v258_v51, 1e-24  ;;  %4659 = vrsqrt.f32 %v277_v30 }
 0x19e   :  { %6212 = vst [vmem:[#allocation5_spill] sm:$0xff] %v5045_v33 }
 0x19f   :  { %4661 = vrsqrt.f32 %v278_v32  ;;  %v4656_v34 = vpop.eup %4655 }
 0x1a0   :  { %4474 = vmatmul.mubr.msk.bf16.gmra.mrb[16].mxu1 %vm228_vm2, %v5045_v33  ;;  %v301_v62 = vmul.f32 %v4656_v34, %v4965_v14 }
 0x1a1   :  { %v4658_v35 = vpop.eup %4657  ;;  %4477 = vmatprep.mubr.msk.bf16.mxu1 %vm4697_vm0, %v6192_v0 }
 0x1a2   :  { %v261_v36 = vpop.xlane.xlu0 %260  ;;  %v302_v4 = vmul.f32 %v4658_v35, %v4971_v18 }
 0x1a3   :  { %v279_v37 = vmax.f32 %v261_v36, 1e-24 }
 0x1a4   :  { %v264_v38 = vpop.xlane.xlu1 %263  ;;  %v5053_v43 = vpack.c.bf16 %v302_v4, %v301_v62 }
 0x1a5   :  { %v280_v41 = vmax.f32 %v264_v38, 1e-24  ;;  %4663 = vrsqrt.f32 %v279_v37 }
 0x1a6   :  { %6213 = vst [vmem:[#allocation6_spill] sm:$0xff] %v5053_v43 }
 0x1a7   :  { %4665 = vrsqrt.f32 %v280_v41  ;;  %v4660_v46 = vpop.eup %4659 }
 0x1a8   :  { %4478 = vmatmul.mubr.msk.bf16.gmra.mrb[20].mxu1 %vm228_vm2, %v5053_v43  ;;  %v303_v50 = vmul.f32 %v4660_v46, %v4993_v28 }
 0x1a9   :  { %v4662_v47 = vpop.eup %4661  ;;  %4481 = vmatprep.mubr.msk.bf16.mxu1 %vm4697_vm0, %v6192_v0 }
 0x1aa   :  { %v268_v48 = vpop.xlane.xlu0 %267  ;;  %v304_v18 = vmul.f32 %v4662_v47, %v4996_v31 }
 0x1ab   :  { %v281_v49 = vmax.f32 %v268_v48, 1e-24 }
 0x1ac   :  { %v5061_v14 = vpack.c.bf16 %v304_v18, %v303_v50 }
 0x1ad   :  { %4667 = vrsqrt.f32 %v281_v49 }
 0x1ae   :  { %6214 = vst [vmem:[#allocation7_spill] sm:$0xff] %v5061_v14 }
 0x1af   :  { %v4664_v52 = vpop.eup %4663 }
 0x1b0   :  { %4482 = vmatmul.mubr.msk.bf16.gmra.mrb[24].mxu1 %vm228_vm2, %v5061_v14  ;;  %v305_v57 = vmul.f32 %v4664_v52, %v5010_v39  ;;  %v4363_v39 = vpop.f32.mrb[0].mxu1 }
 0x1b1   :  { %v4666_v54 = vpop.eup %4665  ;;  %4485 = vmatprep.mubr.msk.bf16.mxu1 %vm4697_vm0, %v6192_v0 }
 0x1b2   :  { %v306_v56 = vmul.f32 %v4666_v54, %v5013_v44  ;;  %v4364_v44 = vpop.f32.mrb[1].mxu1 }
 0x1b3   :  { %v5082_v60 = vadd.f32 %v4364_v44, %v4363_v39  ;;  %v4366_v61 = vpop.f32.mrb[2].mxu1 }
 0x1b4   :  { %v5069_v58 = vpack.c.bf16 %v306_v56, %v305_v57  ;;  %v4367_v63 = vpop.f32.mrb[3].mxu1 }
 0x1b5   :  { %6217 = vst [vmem:[#allocation10_spill] sm:$0xff] %v5082_v60  ;;  %v5084_v1 = vpop.f32.mrb[4].mxu1 }
 0x1b6   :  { %6215 = vst [vmem:[#allocation8_spill] sm:$0xff] %v5069_v58  ;;  %v4459_v2 = vpop.f32.mrb[5].mxu1 }
 0x1b7   :  { %v4668_v31 = vpop.eup %4667  ;;  %v562_v3 = vpop.f32.mrb[6].mxu1 }
 0x1b8   :  { %4486 = vmatmul.mubr.msk.bf16.gmra.mrb[28].mxu1 %vm228_vm2, %v5069_v58  ;;  %v307_v28 = vmul.f32 %v4668_v31, %v5022_v53  ;;  %v4460_v40 = vpop.f32.mrb[7].mxu1  ;;  %v6191_v53 = vlaneseq }
 0x1b9   :  { %4489 = vmatprep.mubr.msk.bf16.mxu1 %vm4697_vm0, %v6192_v0 }
 0x1ba   :  { %v5076_v59 = vpack.c.bf16 %v307_v28, %v307_v28  ;;  %v5087_v7 = vshrl.u32 %v6191_v53, 7 }
 0x1bc   :  { %6216 = vst [vmem:[#allocation9_spill] sm:$0xff] %v5076_v59  ;;  %6218 = vst [vmem:[#allocation11_spill] sm:$0xff] %v5087_v7  ;;  %v5090_v9 = vsub.s32 %v892_v8, %v5087_v7 }
 0x1c0   :  { %4490 = vmatmul.mubr.msk.bf16.gmra.mrb[32].mxu1 %vm228_vm2, %v5076_v59 }
 0x1c1   :  { %4539 = vmatprep.mubr.msk.bf16.mxu1 %vm4697_vm0, %v6192_v0 }
 0x263   :  { %v643_v10 = vpop.f32.mrb[8].mxu1 }
 0x264   :  { %v889_v11 = vcombine.high %v643_v10, %v643_v10  ;;  %v896_v12 = vrot.slane %v643_v10, %v5090_v9  ;;  %v4467_v13 = vpop.f32.mrb[9].mxu1 }
 0x265   :  { %v646_v16 = vpop.f32.mrb[10].mxu1 }
 0x266   :  { %v903_v17 = vrot.slane %v889_v11, %v5090_v9  ;;  %v904_v19 = vcombine.high %v896_v12, %v896_v12  ;;  %v698_v20 = vpack.c.bf16 %v646_v16, %v643_v10  ;;  %v4468_v21 = vpop.f32.mrb[11].mxu1  ;;  %v938_v42 = vcombine.high %v646_v16, %v646_v16 }
 0x267   :  { %v945_v45 = vrot.slane %v646_v16, %v5090_v9  ;;  %v912_v27 = vrot.slane %v896_v12, %v5090_v9 }
 0x268   :  { %v905_v23 = vcombine.high %v903_v17, %v903_v17  ;;  %v926_v25 = vrot.slane %v904_v19, %v5090_v9  ;;  %v709_v26 = vsel %vm228_vm2, %v698_v20, 0  ;;  %v952_v29 = vrot.slane %v938_v42, %v5090_v9 }
 0x269   :  { %v953_v30 = vcombine.high %v945_v45, %v945_v45  ;;  %4494 = vmatpush3.bf16.xpose.msra.mxu0 %v709_v26  ;;  %v919_v37 = vrot.slane %v903_v17, %v5090_v9  ;;  %v961_v38 = vrot.slane %v945_v45, %v5090_v9 }
 0x26a   :  { %4495 = vmatprep.subr.bf16.mxu0 %v6192_v0  ;;  %v933_v51 = vrot.slane %v905_v23, %v5090_v9  ;;  %v1501_v55 = vcombine.low %v912_v27, %v926_v25  ;;  %v954_v32 = vcombine.high %v952_v29, %v952_v29  ;;  %v4288_v47 = vcombine.high %v912_v27, %v926_v25 }
 0x26b   :  { %v975_v34 = vrot.slane %v953_v30, %v5090_v9  ;;  %v651_v35 = vpop.f32.mrb[12].mxu1  ;;  %v968_v48 = vrot.slane %v952_v29, %v5090_v9 }
 0x26c   :  { %v4471_v4 = vpop.f32.mrb[13].mxu1  ;;  %v982_v62 = vrot.slane %v954_v32, %v5090_v9  ;;  %v987_v41 = vcombine.high %v651_v35, %v651_v35  ;;  %v994_v18 = vrot.slane %v651_v35, %v5090_v9  ;;  %v1503_v52 = vcombine.low %v919_v37, %v933_v51 }
 0x26d   :  { %v654_v46 = vpop.f32.mrb[14].mxu1  ;;  %v4289_v54 = vcombine.high %v919_v37, %v933_v51  ;;  %v5110_v56 = vrot.slane %v1501_v55, %v5090_v9  ;;  %v1550_v57 = vcombine.low %v961_v38, %v975_v34  ;;  %v4290_v31 = vcombine.high %v961_v38, %v975_v34 }
 0x26e   :  { %v699_v49 = vpack.c.bf16 %v654_v46, %v651_v35  ;;  %v4472_v50 = vpop.f32.mrb[15].mxu1  ;;  %v1001_v28 = vrot.slane %v987_v41, %v5090_v9  ;;  %v1002_v39 = vcombine.high %v994_v18, %v994_v18  ;;  %v1036_v44 = vcombine.high %v654_v46, %v654_v46 }
 0x26f   :  { %v1552_v61 = vcombine.low %v968_v48, %v982_v62  ;;  %v4291_v63 = vcombine.high %v968_v48, %v982_v62  ;;  %v1043_v2 = vrot.slane %v654_v46, %v5090_v9  ;;  %v1010_v5 = vrot.slane %v994_v18, %v5090_v9 }
 0x270   :  { %v712_v3 = vsel %vm228_vm2, %v699_v49, 0  ;;  %v1003_v40 = vcombine.high %v1001_v28, %v1001_v28  ;;  %v1024_v6 = vrot.slane %v1002_v39, %v5090_v9  ;;  %v1050_v8 = vrot.slane %v1036_v44, %v5090_v9 }
 0x271   :  { %4496 = vmatpush3.bf16.xpose.msra.mxu0 %v712_v3  ;;  %v5119_v10 = vrot.slane %v4288_v47, %v5090_v9  ;;  %v5122_v11 = vrot.slane %v1503_v52, %v5090_v9  ;;  %v5125_v12 = vrot.slane %v4289_v54, %v5090_v9  ;;  %v1051_v13 = vcombine.high %v1043_v2, %v1043_v2 }
 0x272   :  { %4497 = vmatprep.subr.bf16.mxu0 %v6192_v0  ;;  %v1017_v17 = vrot.slane %v1001_v28, %v5090_v9  ;;  %v1031_v19 = vrot.slane %v1003_v40, %v5090_v9  ;;  %v1599_v20 = vcombine.low %v1010_v5, %v1024_v6  ;;  %v1052_v21 = vcombine.high %v1050_v8, %v1050_v8 }
 0x273   :  { %v659_v16 = vpop.f32.mrb[16].mxu1  ;;  %v4292_v45 = vcombine.high %v1010_v5, %v1024_v6  ;;  %v1073_v23 = vrot.slane %v1051_v13, %v5090_v9  ;;  %v5133_v29 = vrot.slane %v1550_v57, %v5090_v9  ;;  %v5136_v30 = vrot.slane %v4290_v31, %v5090_v9 }
 0x274   :  { %v4475_v42 = vpop.f32.mrb[17].mxu1  ;;  %v1085_v25 = vcombine.high %v659_v16, %v659_v16  ;;  %v1092_v26 = vrot.slane %v659_v16, %v5090_v9  ;;  %v5139_v51 = vrot.slane %v1552_v61, %v5090_v9  ;;  %v5142_v55 = vrot.slane %v4291_v63, %v5090_v9 }
 0x275   :  { %v662_v27 = vpop.f32.mrb[18].mxu1  ;;  %v1601_v34 = vcombine.low %v1017_v17, %v1031_v19  ;;  %v1059_v35 = vrot.slane %v1043_v2, %v5090_v9  ;;  %v1066_v38 = vrot.slane %v1050_v8, %v5090_v9  ;;  %v1080_v62 = vrot.slane %v1052_v21, %v5090_v9 }
 0x276   :  { %v4476_v32 = vpop.f32.mrb[19].mxu1  ;;  %v1099_v4 = vrot.slane %v1085_v25, %v5090_v9  ;;  %v1100_v41 = vcombine.high %v1092_v26, %v1092_v26  ;;  %v4293_v47 = vcombine.high %v1017_v17, %v1031_v19  ;;  %v5153_v48 = vrot.slane %v1599_v20, %v5090_v9 }
 0x277   :  { %v5156_v18 = vrot.slane %v4292_v45, %v5090_v9  ;;  %v1648_v49 = vcombine.low %v1059_v35, %v1073_v23  ;;  %v4294_v50 = vcombine.high %v1059_v35, %v1073_v23  ;;  %v700_v57 = vpack.c.bf16 %v662_v27, %v659_v16 }
 0x278   :  { %v1101_v52 = vcombine.high %v1099_v4, %v1099_v4  ;;  %v1122_v54 = vrot.slane %v1100_v41, %v5090_v9  ;;  %v5160_v31 = vrot.slane %v1601_v34, %v5090_v9  ;;  %v1108_v28 = vrot.slane %v1092_v26, %v5090_v9 }
 0x279   :  { %v1134_v39 = vcombine.high %v662_v27, %v662_v27  ;;  %v1141_v44 = vrot.slane %v662_v27, %v5090_v9  ;;  %v1650_v63 = vcombine.low %v1066_v38, %v1080_v62  ;;  %v4295_v2 = vcombine.high %v1066_v38, %v1080_v62 }
 0x27a   :  { %v1129_v3 = vrot.slane %v1101_v52, %v5090_v9  ;;  %v715_v40 = vsel %vm228_vm2, %v700_v57, 0  ;;  %v1115_v6 = vrot.slane %v1099_v4, %v5090_v9  ;;  %v5169_v19 = vrot.slane %v4293_v47, %v5090_v9 }
 0x27b   :  { %v667_v61 = vpop.f32.mrb[20].mxu1  ;;  %v1148_v8 = vrot.slane %v1134_v39, %v5090_v9  ;;  %v1149_v13 = vcombine.high %v1141_v44, %v1141_v44  ;;  %4498 = vmatpush3.bf16.xpose.msra.mxu0 %v715_v40  ;;  %v5172_v20 = vrot.slane %v1648_v49, %v5090_v9  ;;  %v5175_v21 = vrot.slane %v4294_v50, %v5090_v9 }
 0x27c   :  { %v4479_v5 = vpop.f32.mrb[21].mxu1  ;;  %v1183_v16 = vcombine.high %v667_v61, %v667_v61  ;;  %v1697_v42 = vcombine.low %v1108_v28, %v1122_v54  ;;  %4499 = vmatprep.subr.bf16.mxu0 %v6192_v0  ;;  %v4296_v23 = vcombine.high %v1108_v28, %v1122_v54  ;;  %v1699_v25 = vcombine.low %v1115_v6, %v1129_v3 }
 0x27d   :  { %v670_v17 = vpop.f32.mrb[22].mxu1  ;;  %v1150_v26 = vcombine.high %v1148_v8, %v1148_v8  ;;  %v1190_v27 = vrot.slane %v667_v61, %v5090_v9  ;;  %v4297_v32 = vcombine.high %v1115_v6, %v1129_v3  ;;  %v1171_v34 = vrot.slane %v1149_v13, %v5090_v9 }
 0x27e   :  { %v4480_v45 = vpop.f32.mrb[23].mxu1  ;;  %v1197_v35 = vrot.slane %v1183_v16, %v5090_v9  ;;  %v701_v4 = vpack.c.bf16 %v670_v17, %v667_v61  ;;  %v5182_v38 = vrot.slane %v1650_v63, %v5090_v9  ;;  %v5185_v62 = vrot.slane %v4295_v2, %v5090_v9 }
 0x27f   :  { %v1157_v41 = vrot.slane %v1141_v44, %v5090_v9  ;;  %v1198_v47 = vcombine.high %v1190_v27, %v1190_v27  ;;  %v1178_v49 = vrot.slane %v1150_v26, %v5090_v9  ;;  %v5190_v52 = vrot.slane %v1190_v27, %v5090_v9 }
 0x280   :  { %v1199_v50 = vcombine.high %v1197_v35, %v1197_v35  ;;  %v1232_v54 = vcombine.high %v670_v17, %v670_v17  ;;  %v5193_v57 = vrot.slane %v1697_v42, %v5090_v9  ;;  %v5196_v28 = vrot.slane %v4296_v23, %v5090_v9 }
 0x281   :  { %6219 = vst [vmem:[#allocation12_spill] sm:$0xff] %v5190_v52  ;;  %v5199_v39 = vrot.slane %v1699_v25, %v5090_v9  ;;  %v1164_v61 = vrot.slane %v1148_v8, %v5090_v9  ;;  %v5205_v63 = vrot.slane %v4297_v32, %v5090_v9  ;;  %v1746_v2 = vcombine.low %v1157_v41, %v1171_v34 }
 0x282   :  { %v1220_v3 = vrot.slane %v1198_v47, %v5090_v9  ;;  %v1227_v40 = vrot.slane %v1199_v50, %v5090_v9  ;;  %v4298_v6 = vcombine.high %v1157_v41, %v1171_v34  ;;  %v1213_v13 = vrot.slane %v1197_v35, %v5090_v9 }
 0x283   :  { %v5202_v44 = vpop.f32.mrb[24].mxu1  ;;  %v1239_v16 = vrot.slane %v670_v17, %v5090_v9  ;;  %v1246_v42 = vrot.slane %v1232_v54, %v5090_v9  ;;  %v1748_v8 = vcombine.low %v1164_v61, %v1178_v49  ;;  %v1228_v23 = vcombine.high %v5190_v52, %v5190_v52 }
 0x284   :  { %v4483_v5 = vpop.f32.mrb[25].mxu1  ;;  %v1230_v25 = vcombine.high %v1220_v3, %v1220_v3  ;;  %v1231_v26 = vcombine.high %v1227_v40, %v1227_v40  ;;  %v4299_v41 = vcombine.high %v1164_v61, %v1178_v49  ;;  %v5217_v35 = vrot.slane %v1746_v2, %v5090_v9 }
 0x285   :  { %v678_v45 = vpop.f32.mrb[26].mxu1  ;;  %v1247_v32 = vcombine.high %v1239_v16, %v1239_v16  ;;  %v1248_v47 = vcombine.high %v1246_v42, %v1246_v42  ;;  %v1255_v50 = vrot.slane %v1239_v16, %v5090_v9  ;;  %v1262_v34 = vrot.slane %v1246_v42, %v5090_v9 }
 0x286   :  { %v4484_v27 = vpop.f32.mrb[27].mxu1  ;;  %v718_v17 = vsel %vm228_vm2, %v701_v4, 0  ;;  %v1281_v54 = vcombine.high %v5202_v44, %v5202_v44  ;;  %v5223_v5 = vrot.slane %v4298_v6, %v5090_v9  ;;  %v1229_v53 = vcombine.high %v1213_v13, %v1213_v13 }
 0x287   :  { %v1269_v27 = vrot.slane %v1247_v32, %v5090_v9  ;;  %v1276_v36 = vrot.slane %v1248_v47, %v5090_v9  ;;  %4500 = vmatpush3.bf16.xpose.msra.mxu0 %v718_v17  ;;  %v5227_v16 = vcombine.low %v1220_v3, %v1228_v23  ;;  %v5229_v49 = vcombine.low %v1231_v26, %v1255_v50 }
 0x288   :  { %v1288_v61 = vrot.slane %v5202_v44, %v5090_v9  ;;  %v1295_v4 = vrot.slane %v1281_v54, %v5090_v9  ;;  %4501 = vmatprep.subr.bf16.mxu0 %v6192_v0  ;;  %v5235_v2 = vcombine.low %v1230_v25, %v1213_v13  ;;  %v1277_v6 = vcombine.high %v1255_v50, %v1255_v50 }
 0x289   :  { %v1278_v42 = vcombine.high %v1262_v34, %v1262_v34  ;;  %v1280_v46 = vcombine.high %v1276_v36, %v1276_v36  ;;  %v1279_v47 = vcombine.high %v1269_v27, %v1269_v27  ;;  %v5241_v37 = vrot.slane %v1748_v8, %v5090_v9 }
 0x28a   :  { %v1296_v17 = vcombine.high %v1288_v61, %v1288_v61  ;;  %v1297_v3 = vcombine.high %v1295_v4, %v1295_v4  ;;  %v1304_v23 = vrot.slane %v1288_v61, %v5090_v9  ;;  %v5244_v54 = vrot.slane %v4299_v41, %v5090_v9 }
 0x28b   :  { %v5237_v32 = vpop.f32.mrb[28].mxu1  ;;  %v5246_v0 = vcombine.low %v1227_v40, %v1229_v53  ;;  %v702_v13 = vpack.c.bf16 %v678_v45, %v5202_v44  ;;  %v5257_v59 = vcombine.low %v1269_v27, %v1277_v6  ;;  %v1311_v41 = vrot.slane %v1295_v4, %v5090_v9 }
 0x28c   :  { %v4487_v26 = vpop.f32.mrb[29].mxu1  ;;  %v1318_v22 = vrot.slane %v1296_v17, %v5090_v9  ;;  %v1325_v61 = vrot.slane %v1297_v3, %v5090_v9  ;;  %v1330_v53 = vcombine.high %v678_v45, %v678_v45  ;;  %v1337_v40 = vrot.slane %v678_v45, %v5090_v9 }
 0x28d   :  { %v5249_v25 = vpop.f32.mrb[30].mxu1  ;;  %v5255_v26 = vcombine.low %v1280_v46, %v1304_v23  ;;  %v5263_v58 = vcombine.low %v1279_v47, %v1262_v34  ;;  %v5265_v50 = vcombine.low %v1276_v36, %v1278_v42  ;;  %v1326_v14 = vcombine.high %v1304_v23, %v1304_v23 }
 0x28e   :  { %v4488_v8 = vpop.f32.mrb[31].mxu1  ;;  %v1329_v17 = vcombine.high %v1325_v61, %v1325_v61  ;;  %v1328_v3 = vcombine.high %v1318_v22, %v1318_v22  ;;  %v1344_v46 = vrot.slane %v1330_v53, %v5090_v9  ;;  %v1353_v4 = vrot.slane %v1337_v40, %v5090_v9 }
 0x28f   :  { %v1345_v8 = vcombine.high %v1337_v40, %v1337_v40  ;;  %v721_v45 = vsel %vm228_vm2, %v702_v13, 0  ;;  %v1379_v6 = vcombine.high %v5237_v32, %v5237_v32  ;;  %v1327_v34 = vcombine.high %v1311_v41, %v1311_v41 }
 0x290   :  { %v1346_v42 = vcombine.high %v1344_v46, %v1344_v46  ;;  %v1360_v47 = vrot.slane %v1344_v46, %v5090_v9  ;;  %4502 = vmatpush3.bf16.xpose.msra.mxu0 %v721_v45  ;;  %v5280_v27 = vcombine.low %v1329_v17, %v1353_v4  ;;  %v1386_v13 = vrot.slane %v5237_v32, %v5090_v9 }
 0x291   :  { %v1367_v53 = vrot.slane %v1345_v8, %v5090_v9  ;;  %v1393_v40 = vrot.slane %v1379_v6, %v5090_v9  ;;  %v6220_v44 = vmov 0.0   ;;  %v5288_v24 = vcombine.low %v1318_v22, %v1326_v14 }
 0x292   :  { %4503 = vmatprep.subr.bf16.mxu0 %v6220_v44  ;;  %v5290_v46 = vcombine.low %v1328_v3, %v1311_v41  ;;  %v1374_v45 = vrot.slane %v1346_v42, %v5090_v9  ;;  %v1375_v17 = vcombine.high %v1353_v4, %v1353_v4  ;;  %v1394_v33 = vcombine.high %v1386_v13, %v1386_v13 }
 0x293   :  { %v5277_v23 = vpop.f32.mrb[32].mxu1  ;;  %6221 = vst [vmem:[#allocation13_spill] sm:$0xff] %v5288_v24  ;;  %v1395_v15 = vcombine.high %v1393_v40, %v1393_v40  ;;  %v1402_v60 = vrot.slane %v1386_v13, %v5090_v9  ;;  %v1376_v7 = vcombine.high %v1360_v47, %v1360_v47  ;;  %v1377_v22 = vcombine.high %v1367_v53, %v1367_v53 }
 0x294   :  { %v4491_v43 = vpop.f32.mrb[33].mxu1  ;;  %v1378_v36 = vcombine.high %v1374_v45, %v1374_v45  ;;  %v1409_v14 = vrot.slane %v1393_v40, %v5090_v9  ;;  %v1416_v41 = vrot.slane %v1394_v33, %v5090_v9  ;;  %v1428_v13 = vcombine.high %v5249_v25, %v5249_v25 }
 0x295   :  { %v694_v8 = vpop.f32.mrb[34].mxu1  ;;  %v5296_v43 = vcombine.low %v1325_v61, %v1327_v34  ;;  %v1423_v3 = vrot.slane %v1395_v15, %v5090_v9  ;;  %v1424_v4 = vcombine.high %v1402_v60, %v1402_v60  ;;  %v5311_v40 = vcombine.low %v1367_v53, %v1375_v17 }
 0x296   :  { %v4492_v52 = vpop.f32.mrb[35].mxu1  ;;  %v5301_v42 = vcombine.low %v1378_v36, %v1402_v60  ;;  %v1426_v33 = vcombine.high %v1416_v41, %v1416_v41  ;;  %v1435_v60 = vrot.slane %v5249_v25, %v5090_v9  ;;  %v5319_v8 = vcombine.low %v1377_v22, %v1360_v47 }
 0x297   :  { %v703_v52 = vpack.c.bf16 %v5249_v25, %v5237_v32  ;;  %v1442_v32 = vrot.slane %v1428_v13, %v5090_v9  ;;  %v5321_v6 = vcombine.low %v1374_v45, %v1376_v7  ;;  %v1425_v61 = vcombine.high %v1409_v14, %v1409_v14 }
 0x298   :  { %v1427_v24 = vcombine.high %v1423_v3, %v1423_v3  ;;  %v5323_v53 = vcombine.low %v1416_v41, %v1424_v4  ;;  %v1443_v17 = vcombine.high %v1435_v60, %v1435_v60  ;;  %v5327_v25 = vcombine.low %v1426_v33, %v1409_v14 }
 0x299   :  { %v724_v36 = vsel %vm228_vm2, %v703_v52, 0  ;;  %v1444_v34 = vcombine.high %v1442_v32, %v1442_v32  ;;  %v1458_v15 = vrot.slane %v1442_v32, %v5090_v9  ;;  %v1451_v13 = vrot.slane %v1435_v60, %v5090_v9 }
 0x29a   :  { %4504 = vmatpush3.bf16.xpose.msra.mxu0 %v724_v36  ;;  %v704_v47 = vpack.c.bf16 %v5277_v23, %v5277_v23  ;;  %v5334_v7 = vrot.slane %v5277_v23, %v5090_v9  ;;  %v1465_v22 = vrot.slane %v1443_v17, %v5090_v9  ;;  %v5348_v60 = vcombine.low %v1423_v3, %v1425_v61 }
 0x29b   :  { %4505 = vmatprep.subr.bf16.mxu0 %v6220_v44  ;;  %v1472_v41 = vrot.slane %v1444_v34, %v5090_v9  ;;  %v1474_v4 = vcombine.high %v1458_v15, %v1458_v15  ;;  %v5344_v33 = vcombine.low %v1427_v24, %v1451_v13  ;;  %v2022_v34 = vrot.slane %v5327_v25, %v5090_v9 }
 0x29c   :  { %6222 = vst [vmem:[#allocation14_spill] sm:$0xff] %v5334_v7  ;;  %v1491_v23 = vrot.slane %v5334_v7, %v5090_v9  ;;  %v727_v45 = vsel %vm228_vm2, %v704_v47, 0  ;;  %v6223_v24 = vcombine.low %v5110_v56, %v5119_v10  ;;  %v1582_v14 = vcombine.low %v5133_v29, %v5136_v30 }
 0x29d   :  { %v2056_v36 = vcombine.low %v1472_v41, %v1474_v4  ;;  %v1476_v17 = vcombine.high %v1472_v41, %v1472_v41  ;;  %v1473_v3 = vcombine.high %v1451_v13, %v1451_v13  ;;  %v1475_v61 = vcombine.high %v1465_v22, %v1465_v22 }
 0x29e   :  { %v1541_v52 = vrot.slane %v6223_v24, %v5090_v9  ;;  %v6224_v41 = vcombine.low %v5122_v11, %v5125_v12  ;;  %v1583_v47 = vcombine.low %v5139_v51, %v5142_v55  ;;  %v1729_v56 = vcombine.low %v5193_v57, %v5196_v28 }
 0x29f   :  { %v2057_v7 = vcombine.low %v1476_v17, %v1491_v23  ;;  %v2078_v32 = vrot.slane %v2056_v36, %v5090_v9  ;;  %v1730_v10 = vcombine.low %v5199_v39, %v5205_v63  ;;  %v1590_v30 = vrot.slane %v1582_v14, %v5090_v9 }
 0x2a0   :  { %v1548_v4 = vrot.slane %v6224_v41, %v5090_v9  ;;  %v1778_v11 = vcombine.low %v5217_v35, %v5223_v5  ;;  %v1779_v12 = vcombine.low %v5241_v37, %v5244_v54  ;;  %v1597_v51 = vrot.slane %v1583_v47, %v5090_v9 }
 0x2a1   :  { %v2085_v29 = vrot.slane %v2057_v7, %v5090_v9  ;;  %v1737_v55 = vrot.slane %v1729_v56, %v5090_v9  ;;  %v1744_v57 = vrot.slane %v1730_v10, %v5090_v9  ;;  %v1631_v28 = vcombine.low %v5153_v48, %v5156_v18 }
 0x2a2   :  { %4506 = vmatpush3.bf16.xpose.msra.mxu0 %v727_v45  ;;  %v1786_v63 = vrot.slane %v1778_v11, %v5090_v9  ;;  %v1793_v13 = vrot.slane %v1779_v12, %v5090_v9  ;;  %v1632_v35 = vcombine.low %v5160_v31, %v5169_v19  ;;  %v2054_v37 = vcombine.low %v1465_v22, %v1473_v3 }
 0x2a3   :  { %4511 = vmatprep.subr.bf16.mxu0 %v6220_v44  ;;  %v2087_v39 = vcombine.low %v2078_v32, %v2085_v29  ;;  %v1549_v5 = vcombine.low %v1541_v52, %v1548_v4  ;;  %v1598_v54 = vcombine.low %v1590_v30, %v1597_v51  ;;  %v1680_v7 = vcombine.low %v5172_v20, %v5175_v21  ;;  %v6233_v29 = vld [vmem:[#allocation13_spill] sm:$0xff] }
 0x2a4   :  { %v1745_v45 = vcombine.low %v1737_v55, %v1744_v57  ;;  %v1794_v14 = vcombine.low %v1786_v63, %v1793_v13  ;;  %v1646_v23 = vrot.slane %v1632_v35, %v5090_v9  ;;  %v1681_v48 = vcombine.low %v5182_v38, %v5185_v62 }
 0x2a5   :  { %v2036_v18 = vrot.slane %v5344_v33, %v5090_v9  ;;  %v2055_v32 = vcombine.low %v1475_v61, %v1458_v15  ;;  %v5395_v36 = vpack.c.bf16 %v1598_v54, %v1549_v5  ;;  %v1833_v31 = vrot.slane %v5246_v0, %v5090_v9 }
 0x2a6   :  { %v6225_v19 = vpack.c.bf16 %v5084_v1, %v5084_v1  ;;  %v5403_v20 = vpack.c.bf16 %v1794_v14, %v1745_v45  ;;  %v1639_v21 = vrot.slane %v1631_v28, %v5090_v9  ;;  %v1688_v38 = vrot.slane %v1680_v7, %v5090_v9 }
 0x2a7   :  { %v1695_v62 = vrot.slane %v1681_v48, %v5090_v9  ;;  %v2064_v15 = vrot.slane %v2054_v37, %v5090_v9  ;;  %v6226_v22 = vrot.slane %v5235_v2, %v5090_v9  ;;  %v6227_v0 = vrot.slane %v5227_v16, %v5090_v9 }
 0x2a8   :  { %v6228_v1 = vrot.slane %v5229_v49, %v5090_v9  ;;  %v1882_v17 = vrot.slane %v5265_v50, %v5090_v9  ;;  %v1647_v24 = vcombine.low %v1639_v21, %v1646_v23  ;;  %v6229_v61 = vrot.slane %v5263_v58, %v5090_v9 }
 0x2a9   :  { %4508 = vmatmul.mubr.msk.bf16.vlgmr.msra.gmra.mrb[28].mxu0 %vm228_vm2, %v6225_v19  ;;  %v1841_v52 = vcombine.low %v6227_v0, %v6226_v22  ;;  %v1696_v3 = vcombine.low %v1688_v38, %v1695_v62  ;;  %v6230_v2 = vrot.slane %v5257_v59, %v5090_v9  ;;  %v1931_v41 = vrot.slane %v5296_v43, %v5090_v9 }
 0x2aa   :  { %v1842_v33 = vcombine.low %v1833_v31, %v6228_v1  ;;  %4519 = vmatprep.mubr.msk.bf16.mxu0 %vm4697_vm0, %v6220_v44  ;;  %v2071_v49 = vrot.slane %v2055_v32, %v5090_v9  ;;  %v6231_v47 = vrot.slane %v5255_v26, %v5090_v9  ;;  %v6232_v59 = vrot.slane %v5290_v46, %v5090_v9 }
 0x2ab   :  { %v1890_v16 = vcombine.low %v6230_v2, %v6229_v61  ;;  %v1849_v4 = vrot.slane %v1841_v52, %v5090_v9  ;;  %v5436_v10 = vpack.c.bf16 %v1696_v3, %v1647_v24  ;;  %v6234_v43 = vrot.slane %v6233_v29, %v5090_v9 }
 0x2ac   :  { %v1856_v50 = vrot.slane %v1842_v33, %v5090_v9  ;;  %v1891_v56 = vcombine.low %v1882_v17, %v6231_v47  ;;  %v6235_v11 = vrot.slane %v5280_v27, %v5090_v9  ;;  %v1980_v55 = vrot.slane %v5321_v6, %v5090_v9  ;;  %v6240_v33 = vld [vmem:[#allocation11_spill] sm:$0xff] }
 0x2ad   :  { %v1898_v58 = vrot.slane %v1890_v16, %v5090_v9  ;;  %v1939_v30 = vcombine.low %v6234_v43, %v6232_v59  ;;  %v6236_v57 = vrot.slane %v5319_v8, %v5090_v9  ;;  %v6237_v46 = vrot.slane %v5311_v40, %v5090_v9 }
 0x2ae   :  { %v1940_v12 = vcombine.low %v1931_v41, %v6235_v11  ;;  %v5448_v51 = vcombine.low %v1849_v4, %v1856_v50  ;;  %v1905_v26 = vrot.slane %v1891_v56, %v5090_v9  ;;  %v2029_v27 = vrot.slane %v5348_v60, %v5090_v9 }
 0x2af   :  { %v1988_v28 = vcombine.low %v6237_v46, %v6236_v57  ;;  %v1947_v63 = vrot.slane %v1939_v30, %v5090_v9  ;;  %v6238_v6 = vrot.slane %v5323_v53, %v5090_v9  ;;  %v6239_v40 = vrot.slane %v5301_v42, %v5090_v9 }
 0x2b0   :  { %v1954_v13 = vrot.slane %v1940_v12, %v5090_v9  ;;  %v5469_v37 = vcombine.low %v1898_v58, %v1905_v26  ;;  %v2086_v5 = vcombine.low %v2064_v15, %v2071_v49  ;;  %v2038_v7 = vcombine.low %v2029_v27, %v2036_v18 }
 0x2b1   :  { %v2037_v35 = vcombine.low %v6238_v6, %v2022_v34  ;;  %v1989_v8 = vcombine.low %v1980_v55, %v6239_v40  ;;  %v2101_v45 = vrot.slane %v2087_v39, %v5090_v9  ;;  %v1996_v25 = vrot.slane %v1988_v28, %v5090_v9 }
 0x2b2   :  { %v5474_v54 = vcombine.low %v1947_v63, %v1954_v13  ;;  %v2135_v60 = vpack.c.bf16 %v5469_v37, %v5448_v51  ;;  %v2094_v34 = vrot.slane %v2086_v5, %v5090_v9  ;;  %v2052_v42 = vrot.slane %v2038_v7, %v5090_v9 }
 0x2b3   :  { %v2003_v53 = vrot.slane %v1989_v8, %v5090_v9  ;;  %v2045_v14 = vrot.slane %v2037_v35, %v5090_v9  ;;  %v4700_v15 = vmov 1983009808   ;;  %v4701_v52 = vmov 1934713408   ;;  %v6241_v8 = vld [vmem:[#allocation14_spill] sm:$0xff] }
 0x2b4   :  { %v5486_v48 = vcombine.low %v2094_v34, %v2101_v45  ;;  %v774_v22 = vunpack.c.l.s4 %v4700_v15  ;;  %v791_v1 = vunpack.c.l.s4 %v4701_v52  ;;  %v1484_v5 = vcombine.high %v6241_v8, %v6241_v8 }
 0x2b5   :  { %v5484_v23 = vcombine.low %v1996_v25, %v2003_v53  ;;  %v5488_v18 = vcombine.low %v2045_v14, %v2052_v42 }
 0x2b6   :  { %v775_v0 = vunpack.c.0.s8 %v774_v22  ;;  %v792_v24 = vunpack.c.0.s8 %v791_v1  ;;  %v1498_v25 = vrot.slane %v1484_v5, %v5090_v9  ;;  %v4703_v22 = vmov 0  }
 0x2b7   :  { %v2136_v39 = vpack.c.bf16 %v5484_v23, %v5474_v54  ;;  %v2137_v32 = vpack.c.bf16 %v5486_v48, %v5488_v18  ;;  %4609 = vset.pattern.permute.xlu1 %v4703_v22  ;;  %4608 = vset.pattern.permute.xlu0 %v4703_v22  ;;  %v5565_v54 = vsub.s32 0, %v6240_v33  ;;  %v2429_v23 = vld [vmem:[%s6183_s2] sm:$0x3] }
 0x2b8   :  { %v5495_v17 = vsub.s32 %v775_v0, %v6240_v33  ;;  %v5499_v2 = vsub.s32 %v792_v24, %v6240_v33  ;;  %v2109_v42 = vrot.slane %v1498_v25, %v5090_v9  ;;  %v6243_v0 = vld [vmem:[#allocation10_spill] sm:$0xff] }
 0x2b9   :  { %v2433_v48 = vrot.slane %v2429_v23, %v5565_v54  ;;  %v4637_v18 = vld [vmem:[%s6184_s10] sm:$0xff]  }
 0x2ba   :  { %4536 = vmatpush3.bf16.msra.mxu1 %v4637_v18 }
 0x2bb   :  { %4537 = vmatprep.subr.bf16.mxu1 %v6220_v44 }
 0x37c   :  { %v763_v31 = vpop.f32.mrb[28].mxu0 }
 0x37d   :  { %v769_v19 = vmul.f32 0.17677669, %v763_v31  ;;  %v4509_v21 = vpop.f32.mrb[29].mxu0  ;;  %v2116_v31 = vrot.slane %v2109_v42, %v5090_v9 }
 0x37e   :  { %v766_v38 = vpop.f32.mrb[30].mxu0  ;;  %v6242_v21 = vld [vmem:[#allocation12_spill] sm:$0xff] }
 0x37f   :  { %771 = vrot.lane.b32.xlu1 %v769_v19, %s4699_s9  ;;  %v4510_v62 = vpop.f32.mrb[31].mxu0  ;;  %v779_v61 = vrot.slane %v769_v19, %v5495_v17  ;;  %v2138_v19 = vpack.c.bf16 %v2116_v31, %v2116_v31  ;;  %v1801_v38 = vrot.slane %v6242_v21, %v5090_v9 }
 0x381   :  { %v1808_v62 = vrot.slane %v1801_v38, %v5090_v9 }
 0x383   :  { %v2134_v15 = vpack.c.bf16 %v1808_v62, %v1808_v62 }
 0x3f1   :  { %v772_v3 = vpop.permute.xlu1 %771 }
 0x3f2   :  { %v787_v16 = vrot.slane %v772_v3, %v5495_v17 }
 0x3f4   :  { %v788_v41 = vcombine.low %v779_v61, %v787_v16  ;;  %v789_v49 = vcombine.high %v779_v61, %v787_v16 }
 0x3f6   :  { %v796_v4 = vrot.slane %v788_v41, %v5499_v2  ;;  %v803_v50 = vrot.slane %v789_v49, %v5499_v2  ;;  %v2160_v49 = vsel %vm2158_vm5, 65535, %v4703_v22  ;;  %vm4233_vm5 = vcmask 1041408  }
 0x3f8   :  { %v807_v47 = vsel %vm806_vm4, %v796_v4, -inf  ;;  %v813_v56 = vsel %vm806_vm4, %v803_v50, -inf  ;;  %v804_v58 = vcombine.high %v796_v4, %v6220_v44  ;;  %v805_v29 = vcombine.high %v803_v50, %v6220_v44 }
 0x3f9   :  { %808 = vmax.xlane.f32.xlu0 %v807_v47 }
 0x3fa   :  { %v810_v59 = vsel %vm806_vm4, %v804_v58, -inf  ;;  %v816_v43 = vsel %vm806_vm4, %v805_v29, -inf }
 0x3fd   :  { %814 = vmax.xlane.f32.xlu0 %v813_v56 }
 0x401   :  { %811 = vmax.xlane.f32.xlu0 %v810_v59 }
 0x405   :  { %817 = vmax.xlane.f32.xlu0 %v816_v43 }
 0x41b   :  { %2143 = vrot.lane.b32.xlu0 %v5395_v36, %s4702_s18 }
 0x41f   :  { %2147 = vrot.lane.b32.xlu0 %v5403_v20, %s4702_s18 }
 0x486   :  { %v809_v30 = vpop.xlane.xlu0 %808 }
 0x487   :  { %v819_v11 = vsub.f32 %v796_v4, %v809_v30 }
 0x489   :  { %v823_v12 = vmul.f32 1.442695, %v819_v11 }
 0x48a   :  { %v815_v26 = vpop.xlane.xlu0 %814 }
 0x48b   :  { %4669 = vpow2.f32 %v823_v12  ;;  %v821_v55 = vsub.f32 %v803_v50, %v815_v26 }
 0x48d   :  { %v827_v57 = vmul.f32 1.442695, %v821_v55 }
 0x48e   :  { %v812_v46 = vpop.xlane.xlu0 %811 }
 0x48f   :  { %4671 = vpow2.f32 %v827_v57  ;;  %v820_v28 = vsub.f32 %v804_v58, %v812_v46 }
 0x491   :  { %v825_v63 = vmul.f32 1.442695, %v820_v28 }
 0x492   :  { %v818_v13 = vpop.xlane.xlu0 %817 }
 0x493   :  { %4673 = vpow2.f32 %v825_v63  ;;  %v822_v27 = vsub.f32 %v805_v29, %v818_v13 }
 0x495   :  { %v5514_v6 = vpop.eup %4669  ;;  %v829_v36 = vmul.f32 1.442695, %v822_v27 }
 0x496   :  { %v2144_v35 = vpop.permute.xlu0 %2143  ;;  %v831_v20 = vsel %vm806_vm4, %v5514_v6, 0.0 }
 0x497   :  { %4675 = vpow2.f32 %v829_v36  ;;  %832 = vadd.xlane.f32.xlu1 %v831_v20  ;;  %4512 = vmatpush3.bf16.msra.mxu0 %v2144_v35  ;;  %v4635_v35 = vld [vmem:[%s6182_s11] sm:$0xff]  }
 0x498   :  { %4513 = vmatprep.subr.bf16.mxu0 %v6220_v44 }
 0x499   :  { %v5519_v40 = vpop.eup %4671 }
 0x49a   :  { %v837_v7 = vsel %vm806_vm4, %v5519_v40, 0.0  ;;  %v2148_v1 = vpop.permute.xlu0 %2147 }
 0x49b   :  { %838 = vadd.xlane.f32.xlu0 %v837_v7 }
 0x49d   :  { %v5525_v45 = vpop.eup %4673 }
 0x49e   :  { %v834_v53 = vsel %vm806_vm4, %v5525_v45, 0.0 }
 0x49f   :  { %835 = vadd.xlane.f32.xlu0 %v834_v53 }
 0x4a1   :  { %v5530_v34 = vpop.eup %4675 }
 0x4a2   :  { %v840_v14 = vsel %vm806_vm4, %v5530_v34, 0.0  ;;  %vm4149_vm4 = vcmask 458112  }
 0x4a3   :  { %841 = vadd.xlane.f32.xlu0 %v840_v14 }
 0x4a8   :  { %2145 = vrot.lane.b32.xlu1 %v5436_v10, %s4702_s18  ;;  %v4258_v10 = vld [vmem:[%s6181_s6] ss:$0 sm:$0xff] }
 0x4a9   :  { %v5559_v52 = vadd.f32 %v6243_v0, %v4258_v10 }
 0x4ab   :  { %v497_v51 = vmul.f32 %v5559_v52, %v5559_v52 }
 0x4ac   :  { %2214 = vrot.lane.b32.xlu1 %v2138_v19, %s4702_s18 }
 0x4ad   :  { %v498_v37 = vsel %vm265_vm3, %v497_v51, 0.0  ;;  %vm4142_vm3 = vcmask 392512  }
 0x4b0   :  { %2435 = vbcast.lane.b32.xlu1 %v2433_v48, 256 }
 0x4b9   :  { %2149 = vrot.lane.b32.xlu0 %v2134_v15, %s4702_s18 }
 0x4bd   :  { %2208 = vrot.lane.b32.xlu0 %v2135_v60, %s4702_s18  ;;  %v2439_v60 = vsub.s32 1, %v6240_v33 }
 0x4c1   :  { %2210 = vrot.lane.b32.xlu0 %v2136_v39, %s4702_s18  ;;  %v2440_v39 = vrot.slane %v2429_v23, %v2439_v60 }
 0x4c3   :  { %2442 = vbcast.lane.b32.xlu1 %v2440_v39, 256  ;;  %v4695_v39 = vld [vmem:[%s6179_s7] sm:$0xf] }
 0x4c5   :  { %2212 = vrot.lane.b32.xlu0 %v2137_v32, %s4702_s18  ;;  %v4638_v32 = vld [vmem:[%s6184_s10 + $0x8] sm:$0xff]  }
 0x4c6   :  { %4538 = vmatpush3.bf16.msra.mxu1 %v4638_v32 }
 0x4c7   :  { %4597 = vmatprep.subr.bf16.mxu1 %v6220_v44 }
 0x4e4   :  { %499 = vadd.xlane.f32.xlu0 %v498_v37 }
 0x524   :  { %v833_v24 = vpop.xlane.xlu1 %832 }
 0x528   :  { %v2146_v3 = vpop.permute.xlu1 %2145  ;;  %v839_v61 = vpop.xlane.xlu0 %838 }
 0x529   :  { %4514 = vmatpush3.bf16.msra.mxu0 %v2146_v3  ;;  %4677 = vrcp.f32 %v839_v61 }
 0x52a   :  { %4515 = vmatprep.subr.bf16.mxu0 %v6220_v44  ;;  %4679 = vrcp.f32 %v833_v24 }
 0x52c   :  { %v836_v16 = vpop.xlane.xlu0 %835 }
 0x52d   :  { %4516 = vmatpush3.bf16.msra.mxu0 %v2148_v1  ;;  %4681 = vrcp.f32 %v836_v16 }
 0x52e   :  { %4517 = vmatprep.subr.bf16.mxu0 %v6220_v44 }
 0x530   :  { %v842_v41 = vpop.xlane.xlu0 %841 }
 0x531   :  { %4683 = vrcp.f32 %v842_v41 }
 0x533   :  { %v4678_v50 = vpop.eup %4677 }
 0x534   :  { %v2150_v4 = vpop.permute.xlu0 %2149  ;;  %v4680_v56 = vpop.eup %4679  ;;  %v849_v58 = vmul.f32 %v4678_v50, %v5519_v40  ;;  %v4636_v40 = vld [vmem:[%s6182_s11 + $0x8] sm:$0xff]  }
 0x535   :  { %v2162_v47 = vand.u32 %v2160_v49, %v2150_v4  ;;  %v847_v29 = vmul.f32 %v4680_v56, %v5514_v6  ;;  %v2215_v6 = vpop.permute.xlu1 %2214 }
 0x536   :  { %v2223_v36 = vand.u32 %v2215_v6, %v2160_v49  ;;  %v4639_v6 = vld [vmem:[%s6185_s12] sm:$0xff]  }
 0x537   :  { %4518 = vmatpush3.bf16.msra.mxu0 %v2162_v47  ;;  %v4682_v59 = vpop.eup %4681  ;;  %v851_v30 = vcombine.low %v847_v29, %v849_v58 }
 0x538   :  { %4523 = vmatprep.subr.bf16.mxu0 %v6220_v44  ;;  %v848_v11 = vmul.f32 %v4682_v59, %v5525_v45  ;;  %v2209_v28 = vpop.permute.xlu0 %2208 }
 0x539   :  { %v858_v55 = vrot.slane %v851_v30, %v5495_v17  ;;  %v2436_v51 = vpop.permute.xlu1 %2435 }
 0x53b   :  { %v4684_v43 = vpop.eup %4683 }
 0x53c   :  { %v850_v12 = vmul.f32 %v4684_v43, %v5530_v34  ;;  %v2211_v27 = vpop.permute.xlu0 %2210 }
 0x53d   :  { %v2443_v24 = vpop.permute.xlu1 %2442 }
 0x53e   :  { %v859_v26 = vcombine.low %v848_v11, %v850_v12 }
 0x540   :  { %v866_v57 = vrot.slane %v859_v26, %v5495_v17  ;;  %v2213_v17 = vpop.permute.xlu0 %2212 }
 0x542   :  { %v867_v46 = vcombine.low %v858_v55, %v866_v57 }
 0x544   :  { %v874_v63 = vrot.slane %v867_v46, %v5499_v2 }
 0x546   :  { %v1499_v13 = vpack.c.bf16 %v874_v63, %v874_v63  ;;  %v875_v2 = vcombine.high %v874_v63, %v6220_v44 }
 0x548   :  { %4520 = vmatmul.mubr.msk.bf16.vlgmr.msra.gmra.mrb[32].mxu0 %vm2154_vm6, %v1499_v13  ;;  %v1500_v20 = vpack.c.bf16 %v875_v2, %v875_v2  ;;  %v6245_v2 = vld [vmem:[#allocation5_spill] sm:$0xff] }
 0x549   :  { %4524 = vmatpush3.bf16.msra.mxu0 %v2209_v28  ;;  %4531 = vmatprep.mubr.msk.bf16.mxu0 %vm4697_vm0, %v6220_v44 }
 0x54a   :  { %4525 = vmatprep.subr.bf16.mxu0 %v6220_v44 }
 0x54d   :  { %4526 = vmatpush3.bf16.msra.mxu0 %v2211_v27 }
 0x54e   :  { %4527 = vmatprep.subr.bf16.mxu0 %v6220_v44 }
 0x551   :  { %4528 = vmatpush3.bf16.msra.mxu0 %v2213_v17  ;;  %v6244_v17 = vld [vmem:[#allocation3_spill] sm:$0xff] }
 0x552   :  { %4529 = vmatprep.subr.bf16.mxu0 %v6220_v44 }
 0x555   :  { %4530 = vmatpush3.bf16.msra.mxu0 %v2223_v36  ;;  %v6246_v36 = vld [vmem:[#allocation4_spill] sm:$0xff] }
 0x556   :  { %4543 = vmatprep.subr.bf16.mxu0 %v6220_v44 }
 0x558   :  { %4532 = vmatmul.mubr.msk.bf16.vlgmr.msra.gmra.mrb[36].mxu0 %vm2154_vm6, %v1500_v20  ;;  %v4640_v20 = vld [vmem:[%s6185_s12 + $0x8] sm:$0xff]  }
 0x559   :  { %4544 = vmatpush3.bf16.msra.mxu0 %v4635_v35  ;;  %4547 = vmatprep.mubr.msk.bf16.mxu0 %vm4697_vm0, %v6220_v44  ;;  %v6247_v35 = vld [vmem:[#allocation6_spill] sm:$0xff] }
 0x55a   :  { %4545 = vmatprep.subr.bf16.mxu0 %v6220_v44 }
 0x55d   :  { %4546 = vmatpush3.bf16.msra.mxu0 %v4636_v40  ;;  %v6248_v40 = vld [vmem:[#allocation7_spill] sm:$0xff] }
 0x55e   :  { %4551 = vmatprep.subr.bf16.mxu0 %v6220_v44 }
 0x571   :  { %v500_v8 = vpop.xlane.xlu0 %499 }
 0x572   :  { %v501_v5 = vmax.f32 %v500_v8, 1e-24  ;;  %v6249_v8 = vld [vmem:[#allocation8_spill] sm:$0xff] }
 0x574   :  { %4685 = vrsqrt.f32 %v501_v5  ;;  %v6250_v5 = vld [vmem:[#allocation9_spill] sm:$0xff] }
 0x57e   :  { %v4686_v7 = vpop.eup %4685 }
 0x57f   :  { %v503_v45 = vmul.f32 %v4686_v7, %v5559_v52 }
 0x581   :  { %v2334_v25 = vpack.c.bf16 %v503_v45, %v503_v45 }
 0x583   :  { %4548 = vmatmul.mubr.msk.bf16.vlgmr.msra.gmra.mrb[40].mxu0 %vm228_vm2, %v2334_v25 }
 0x584   :  { %4553 = vmatprep.mubr.msk.bf16.mxu0 %vm4697_vm0, %v6220_v44 }
 0x61b   :  { %v2198_v53 = vpop.f32.mrb[32].mxu0 }
 0x61c   :  { %v4521_v34 = vpop.f32.mrb[33].mxu0 }
 0x61d   :  { %v2201_v14 = vpop.f32.mrb[34].mxu0 }
 0x61e   :  { %v4522_v42 = vpop.f32.mrb[35].mxu0 }
 0x62b   :  { %v2259_v31 = vpop.f32.mrb[36].mxu0 }
 0x62c   :  { %v2267_v19 = vcombine.low %v2198_v53, %v2259_v31  ;;  %v4533_v21 = vpop.f32.mrb[37].mxu0 }
 0x62d   :  { %v2262_v38 = vpop.f32.mrb[38].mxu0  ;;  %v4641_v21 = vld [vmem:[%s6186_s14] sm:$0xff]  }
 0x62e   :  { %v2269_v62 = vpack.c.bf16 %v2267_v19, %v2267_v19  ;;  %v4534_v15 = vpop.f32.mrb[39].mxu0  ;;  %v4642_v38 = vld [vmem:[%s6186_s14 + $0x8] sm:$0xff]  }
 0x630   :  { %4540 = vmatmul.mubr.msk.bf16.vlgmr.msra.gmra.mrb[36].mxu1 %vm228_vm2, %v2269_v62  ;;  %v6251_v62 = vld [vmem:[#allocation2_spill] sm:$0xff] }
 0x631   :  { %4561 = vmatprep.mubr.msk.bf16.mxu1 %vm4697_vm0, %v6220_v44 }
 0x656   :  { %v2388_v22 = vpop.f32.mrb[40].mxu0 }
 0x657   :  { %v2401_v10 = vrot.slane %v2388_v22, %v5090_v9  ;;  %v4549_v0 = vpop.f32.mrb[41].mxu0 }
 0x658   :  { %v2391_v52 = vpop.f32.mrb[42].mxu0 }
 0x659   :  { %v2402_v37 = vcombine.high %v2401_v10, %v2401_v10  ;;  %v2409_v60 = vrot.slane %v2401_v10, %v5090_v9  ;;  %v4550_v23 = vpop.f32.mrb[43].mxu0 }
 0x65b   :  { %v2416_v48 = vrot.slane %v2402_v37, %v5090_v9  ;;  %v2420_v18 = vrot.slane %v2409_v60, %v5565_v54 }
 0x65d   :  { %v2427_v32 = vadd.f32 %v4695_v39, %v2420_v18  ;;  %v2424_v1 = vrot.slane %v2416_v48, %v5565_v54 }
 0x65f   :  { %v2444_v3 = vmul.f32 %v2436_v51, %v2427_v32  ;;  %v2428_v61 = vadd.f32 %v4695_v39, %v2424_v1 }
 0x661   :  { %v2447_v16 = vsel %vm2446_vm7, %v2444_v3, 0.0  ;;  %v2445_v41 = vmul.f32 %v2443_v24, %v2428_v61  ;;  %v3937_v49 = vcombine.low %v2427_v32, %v2428_v61  ;;  %v6252_v24 = vlaneseq }
 0x662   :  { %v2448_v4 = vrot.slane %v2447_v16, 4 }
 0x663   :  { %v2454_v50 = vsel %vm2446_vm7, %v2445_v41, 0.0  ;;  %v5676_v3 = vand.u32 127, %v6252_v24  ;;  %vm4237_vm7 = vcmask 1045504  }
 0x664   :  { %v2449_v47 = vadd.f32 %v2448_v4, %v2447_v16  ;;  %v2455_v56 = vrot.slane %v2454_v50, 4 }
 0x665   :  { %vm3869_vm9 = vcmp.eq.s32.totalorder %v5676_v3, 0  ;;  %vm3870_vm12 = vcmp.eq.s32.totalorder %v5676_v3, 1 }
 0x666   :  { %v2450_v58 = vrot.slane %v2449_v47, 2  ;;  %v2456_v59 = vadd.f32 %v2455_v56, %v2454_v50 }
 0x668   :  { %v2451_v29 = vadd.f32 %v2450_v58, %v2449_v47  ;;  %v2457_v43 = vrot.slane %v2456_v59, 2 }
 0x66a   :  { %v2452_v30 = vrot.slane %v2451_v29, 1  ;;  %v2458_v11 = vadd.f32 %v2457_v43, %v2456_v59 }
 0x66c   :  { %v2453_v12 = vadd.f32 %v2452_v30, %v2451_v29  ;;  %v2459_v26 = vrot.slane %v2458_v11, 1 }
 0x66e   :  { %v2461_v54 = vpack.c.bf16 %v2453_v12, %v2453_v12  ;;  %v2460_v55 = vadd.f32 %v2459_v26, %v2458_v11 }
 0x670   :  { %v2462_v57 = vpack.c.bf16 %v2460_v55, %v2460_v55  ;;  %v2465_v46 = vunpack.c.l.b16 %v2461_v54 }
 0x672   :  { %v2466_v28 = vunpack.c.l.b16 %v2462_v57 }
 0x674   :  { %v2468_v63 = vsel %vm2467_vm8, %v2466_v28, %v2465_v46 }
 0x675   :  { %v2469_v13 = vpack.c.b16 %v2468_v63, %v2468_v63 }
 0x677   :  { %v2471_v27 = vsel %vm228_vm2, %v2469_v13, 0 }
 0x678   :  { %4552 = vmatpush3.bf16.xpose.msra.mxu0 %v2471_v27  ;;  %4598 = vmatpush3.bf16.xpose.msra.mxu1 %v2471_v27 }
 0x679   :  { %4581 = vmatprep.subr.bf16.mxu0 %v6220_v44 }
 0x67f   :  { %4554 = vmatmul.mubr.msk.bf16.vlgmr.msra.gmra.mrb[44].mxu0 %vm228_vm2, %v6244_v17  ;;  %4562 = vmatmul.mubr.msk.bf16.vlgmr.msra.gmra.mrb[40].mxu1 %vm228_vm2, %v6245_v2 }
 0x680   :  { %4557 = vmatprep.mubr.msk.bf16.mxu0 %vm4697_vm0, %v6220_v44  ;;  %4565 = vmatprep.mubr.msk.bf16.mxu1 %vm4697_vm0, %v6220_v44 }
 0x681   :  { %4582 = vmatpush3.bf16.msra.mxu0 %v4639_v6 }
 0x682   :  { %4583 = vmatprep.subr.bf16.mxu0 %v6220_v44 }
 0x685   :  { %4584 = vmatpush3.bf16.msra.mxu0 %v4640_v20 }
 0x686   :  { %4589 = vmatprep.subr.bf16.mxu0 %v6220_v44 }
 0x687   :  { %4558 = vmatmul.mubr.msk.bf16.gmra.mrb[48].mxu0 %vm228_vm2, %v6246_v36  ;;  %4566 = vmatmul.mubr.msk.bf16.gmra.mrb[44].mxu1 %vm228_vm2, %v6247_v35 }
 0x688   :  { %4569 = vmatprep.mubr.msk.bf16.mxu1 %vm4697_vm0, %v6220_v44  ;;  %4585 = vmatprep.mubr.msk.bf16.mxu0 %vm4697_vm0, %v6220_v44 }
 0x68f   :  { %4570 = vmatmul.mubr.msk.bf16.gmra.mrb[48].mxu1 %vm228_vm2, %v6248_v40 }
 0x690   :  { %4573 = vmatprep.mubr.msk.bf16.mxu1 %vm4697_vm0, %v6220_v44 }
 0x697   :  { %4574 = vmatmul.mubr.msk.bf16.gmra.mrb[52].mxu1 %vm228_vm2, %v6249_v8 }
 0x698   :  { %4577 = vmatprep.mubr.msk.bf16.mxu1 %vm4697_vm0, %v6220_v44 }
 0x69f   :  { %4578 = vmatmul.mubr.msk.bf16.gmra.mrb[56].mxu1 %vm228_vm2, %v6250_v5 }
 0x703   :  { %v2323_v7 = vpop.f32.mrb[36].mxu1 }
 0x704   :  { %v2330_v45 = vcombine.high %v2323_v7, %v2323_v7  ;;  %v4541_v25 = vpop.f32.mrb[37].mxu1  ;;  %v2332_v34 = vadd.f32 %v4695_v39, %v2323_v7 }
 0x705   :  { %v2326_v53 = vpop.f32.mrb[38].mxu1 }
 0x706   :  { %v2333_v14 = vadd.f32 %v4695_v39, %v2330_v45  ;;  %v4542_v42 = vpop.f32.mrb[39].mxu1 }
 0x708   :  { %v3933_v31 = vcombine.low %v2332_v34, %v2333_v14 }
 0x70a   :  { %v3939_v19 = vpack.c.bf16 %v3937_v49, %v3933_v31 }
 0x70c   :  { %4586 = vmatmul.mubr.msk.bf16.vlgmr.msra.gmra.mrb[52].mxu0 %vm228_vm2, %v3939_v19 }
 0x70d   :  { %4593 = vmatprep.mubr.msk.bf16.mxu0 %vm4697_vm0, %v6220_v44  ;;  %4590 = vmatpush3.bf16.msra.mxu0 %v4641_v21  ;;  %vm4121_vm0 = vcmask 195712  }
 0x70e   :  { %4591 = vmatprep.subr.bf16.mxu0 %v6220_v44 }
 0x711   :  { %4592 = vmatpush3.bf16.msra.mxu0 %v4642_v38 }
 0x714   :  { %4594 = vmatmul.mubr.msk.bf16.vlgmr.msra.gmra.mrb[56].mxu0 %vm228_vm2, %v6251_v62  ;;  %vm4135_vm2 = vcmask 326912  }
 0x752   :  { %v2507_v15 = vpop.f32.mrb[44].mxu0  ;;  %v2523_v22 = vpop.f32.mrb[40].mxu1 }
 0x753   :  { %v2561_v10 = vmul.f32 33.333332, %v2507_v15  ;;  %v2565_v0 = vmul.f32 33.333332, %v2523_v22  ;;  %v4555_v52 = vpop.f32.mrb[45].mxu0  ;;  %v4563_v51 = vpop.f32.mrb[41].mxu1 }
 0x754   :  { %v2510_v37 = vpop.f32.mrb[46].mxu0  ;;  %v2526_v60 = vpop.f32.mrb[42].mxu1 }
 0x755   :  { %v2587_v23 = vcombine.high %v2561_v10, %v2561_v10  ;;  %v2594_v48 = vrot.slane %v2561_v10, %v5090_v9  ;;  %v2783_v18 = vcombine.high %v2565_v0, %v2565_v0  ;;  %v2790_v39 = vrot.slane %v2565_v0, %v5090_v9  ;;  %v4556_v32 = vpop.f32.mrb[47].mxu0  ;;  %v4564_v44 = vpop.f32.mrb[43].mxu1 }
 0x756   :  { %v2562_v1 = vmul.f32 33.333332, %v2510_v37  ;;  %v2566_v49 = vmul.f32 33.333332, %v2526_v60 }
 0x757   :  { %v2601_v61 = vrot.slane %v2587_v23, %v5090_v9  ;;  %v2602_v16 = vcombine.high %v2594_v48, %v2594_v48  ;;  %v2797_v41 = vrot.slane %v2783_v18, %v5090_v9  ;;  %v2610_v4 = vrot.slane %v2594_v48, %v5090_v9 }
 0x758   :  { %v2798_v50 = vcombine.high %v2790_v39, %v2790_v39  ;;  %v2636_v47 = vcombine.high %v2562_v1, %v2562_v1  ;;  %v2643_v56 = vrot.slane %v2562_v1, %v5090_v9  ;;  %v2806_v43 = vrot.slane %v2790_v39, %v5090_v9 }
 0x759   :  { %v2603_v58 = vcombine.high %v2601_v61, %v2601_v61  ;;  %v2624_v59 = vrot.slane %v2602_v16, %v5090_v9  ;;  %v2799_v29 = vcombine.high %v2797_v41, %v2797_v41  ;;  %v5685_v30 = vrot.slane %v2601_v61, %v5090_v9 }
 0x75a   :  { %v2820_v11 = vrot.slane %v2798_v50, %v5090_v9  ;;  %v2650_v12 = vrot.slane %v2636_v47, %v5090_v9  ;;  %v2651_v26 = vcombine.high %v2643_v56, %v2643_v56  ;;  %v2515_v54 = vpop.f32.mrb[48].mxu0  ;;  %v2531_v55 = vpop.f32.mrb[44].mxu1  ;;  %v5696_v6 = vrot.slane %v2797_v41, %v5090_v9 }
 0x75b   :  { %v5690_v57 = vrot.slane %v2603_v58, %v5090_v9  ;;  %v3197_v46 = vcombine.low %v2610_v4, %v2624_v59  ;;  %v4315_v28 = vcombine.high %v2610_v4, %v2624_v59  ;;  %v5693_v63 = vrot.slane %v2799_v29, %v5090_v9  ;;  %v4559_v13 = vpop.f32.mrb[49].mxu0  ;;  %v4567_v27 = vpop.f32.mrb[45].mxu1 }
 0x75c   :  { %v3393_v17 = vcombine.low %v2806_v43, %v2820_v11  ;;  %v4323_v2 = vcombine.high %v2806_v43, %v2820_v11  ;;  %v2652_v36 = vcombine.high %v2650_v12, %v2650_v12  ;;  %v2518_v35 = vpop.f32.mrb[50].mxu0  ;;  %v5698_v20 = vpop.f32.mrb[46].mxu1  ;;  %v2659_v7 = vrot.slane %v2643_v56, %v5090_v9 }
 0x75d   :  { %v3199_v40 = vcombine.low %v5685_v30, %v5690_v57  ;;  %v4316_v8 = vcombine.high %v5685_v30, %v5690_v57  ;;  %v5705_v5 = vrot.slane %v3197_v46, %v5090_v9  ;;  %v4560_v45 = vpop.f32.mrb[51].mxu0  ;;  %v4568_v25 = vpop.f32.mrb[47].mxu1  ;;  %v5709_v53 = vrot.slane %v4315_v28, %v5090_v9 }
 0x75e   :  { %v3395_v34 = vcombine.low %v5696_v6, %v5693_v63  ;;  %v4324_v14 = vcombine.high %v5696_v6, %v5693_v63  ;;  %v5716_v42 = vrot.slane %v3393_v17, %v5090_v9  ;;  %v5719_v31 = vrot.slane %v2650_v12, %v5090_v9 }
 0x75f   :  { %v2673_v19 = vrot.slane %v2651_v26, %v5090_v9  ;;  %v5723_v21 = vrot.slane %v2652_v36, %v5090_v9  ;;  %v2832_v38 = vcombine.high %v2566_v49, %v2566_v49  ;;  %v5726_v62 = vrot.slane %v4323_v2, %v5090_v9 }
 0x760   :  { %v2839_v15 = vrot.slane %v2566_v49, %v5090_v9  ;;  %v2563_v22 = vmul.f32 33.333332, %v2515_v54  ;;  %v2567_v10 = vmul.f32 33.333332, %v2531_v55  ;;  %v2564_v37 = vmul.f32 33.333332, %v2518_v35 }
 0x761   :  { %v3246_v0 = vcombine.low %v2659_v7, %v2673_v19  ;;  %v4317_v52 = vcombine.high %v2659_v7, %v2673_v19  ;;  %v3248_v51 = vcombine.low %v5719_v31, %v5723_v21  ;;  %v2846_v23 = vrot.slane %v2832_v38, %v5090_v9 }
 0x762   :  { %v2847_v48 = vcombine.high %v2839_v15, %v2839_v15  ;;  %v2685_v18 = vcombine.high %v2563_v22, %v2563_v22  ;;  %v2539_v39 = vpop.f32.mrb[48].mxu1  ;;  %v2855_v44 = vrot.slane %v2839_v15, %v5090_v9  ;;  %v2692_v1 = vrot.slane %v2563_v22, %v5090_v9 }
 0x763   :  { %v5735_v32 = vrot.slane %v3246_v0, %v5090_v9  ;;  %v2881_v24 = vcombine.high %v2567_v10, %v2567_v10  ;;  %v4571_v61 = vpop.f32.mrb[49].mxu1  ;;  %v5740_v16 = vrot.slane %v4317_v52, %v5090_v9  ;;  %v2848_v41 = vcombine.high %v2846_v23, %v2846_v23 }
 0x764   :  { %v2869_v49 = vrot.slane %v2847_v48, %v5090_v9  ;;  %v2699_v4 = vrot.slane %v2685_v18, %v5090_v9  ;;  %v2542_v50 = vpop.f32.mrb[50].mxu1  ;;  %v5745_v47 = vrot.slane %v2846_v23, %v5090_v9  ;;  %v2700_v56 = vcombine.high %v2692_v1, %v2692_v1 }
 0x765   :  { %v2888_v58 = vrot.slane %v2567_v10, %v5090_v9  ;;  %v2895_v59 = vrot.slane %v2881_v24, %v5090_v9  ;;  %v4572_v29 = vpop.f32.mrb[51].mxu1  ;;  %v5750_v43 = vrot.slane %v2848_v41, %v5090_v9  ;;  %v2708_v26 = vrot.slane %v2692_v1, %v5090_v9 }
 0x766   :  { %v3442_v11 = vcombine.low %v2855_v44, %v2869_v49  ;;  %v2701_v12 = vcombine.high %v2699_v4, %v2699_v4  ;;  %v4325_v54 = vcombine.high %v2855_v44, %v2869_v49  ;;  %v2722_v55 = vrot.slane %v2700_v56, %v5090_v9 }
 0x767   :  { %v2896_v46 = vcombine.high %v2888_v58, %v2888_v58  ;;  %v2897_v28 = vcombine.high %v2895_v59, %v2895_v59  ;;  %v5762_v2 = vrot.slane %v2699_v4, %v5090_v9  ;;  %v5768_v45 = vrot.slane %v2888_v58, %v5090_v9 }
 0x768   :  { %v5759_v17 = vrot.slane %v3442_v11, %v5090_v9  ;;  %v5765_v36 = vrot.slane %v2701_v12, %v5090_v9  ;;  %v3295_v35 = vcombine.low %v2708_v26, %v2722_v55  ;;  %v4319_v7 = vcombine.high %v2708_v26, %v2722_v55 }
 0x769   :  { %v2911_v25 = vrot.slane %v2895_v59, %v5090_v9  ;;  %v2918_v19 = vrot.slane %v2896_v46, %v5090_v9  ;;  %v2925_v38 = vrot.slane %v2897_v28, %v5090_v9  ;;  %v2734_v15 = vcombine.high %v2564_v37, %v2564_v37 }
 0x76a   :  { %v5773_v22 = vpop.f32.mrb[52].mxu1  ;;  %v5776_v10 = vrot.slane %v4325_v54, %v5090_v9  ;;  %v5783_v23 = vrot.slane %v3295_v35, %v5090_v9  ;;  %v2926_v18 = vcombine.high %v5768_v45, %v5768_v45  ;;  %v2741_v24 = vrot.slane %v2564_v37, %v5090_v9 }
 0x76b   :  { %v4575_v48 = vpop.f32.mrb[53].mxu1  ;;  %v2927_v44 = vcombine.high %v2911_v25, %v2911_v25  ;;  %v2928_v1 = vcombine.high %v2918_v19, %v2918_v19  ;;  %v5791_v41 = vrot.slane %v4319_v7, %v5090_v9  ;;  %v2748_v49 = vrot.slane %v2734_v15, %v5090_v9 }
 0x76c   :  { %v5788_v61 = vpop.f32.mrb[54].mxu1  ;;  %v2568_v4 = vmul.f32 33.333332, %v5698_v20  ;;  %v2569_v56 = vmul.f32 33.333332, %v2539_v39  ;;  %v5795_v59 = vcombine.low %v2918_v19, %v2926_v18  ;;  %v2749_v11 = vcombine.high %v2741_v24, %v2741_v24 }
 0x76d   :  { %v4576_v58 = vpop.f32.mrb[55].mxu1  ;;  %v5797_v29 = vcombine.low %v2928_v1, %v2911_v25  ;;  %v2929_v12 = vcombine.high %v2925_v38, %v2925_v38  ;;  %v5799_v26 = vcombine.low %v2925_v38, %v2927_v44  ;;  %v2750_v37 = vcombine.high %v2748_v49, %v2748_v49 }
 0x76e   :  { %v2757_v54 = vrot.slane %v2741_v24, %v5090_v9  ;;  %v2930_v55 = vcombine.high %v2568_v4, %v2568_v4  ;;  %v5803_v46 = vrot.slane %v2748_v49, %v5090_v9  ;;  %v2771_v28 = vrot.slane %v2749_v11, %v5090_v9 }
 0x76f   :  { %v2937_v20 = vrot.slane %v2568_v4, %v5090_v9  ;;  %v2979_v39 = vcombine.high %v2569_v56, %v2569_v56  ;;  %v5808_v35 = vrot.slane %v2750_v37, %v5090_v9  ;;  %v2986_v25 = vrot.slane %v2569_v56, %v5090_v9 }
 0x770   :  { %v2944_v7 = vrot.slane %v2930_v55, %v5090_v9  ;;  %v2570_v19 = vmul.f32 33.333332, %v2542_v50  ;;  %v3344_v38 = vcombine.low %v2757_v54, %v2771_v28  ;;  %v4321_v15 = vcombine.high %v2757_v54, %v2771_v28 }
 0x771   :  { %v2945_v48 = vcombine.high %v2937_v20, %v2937_v20  ;;  %v2953_v18 = vrot.slane %v2937_v20, %v5090_v9  ;;  %v3497_v4 = vrot.slane %v5768_v45, %v5090_v9  ;;  %v2994_v56 = vcombine.high %v2986_v25, %v2986_v25 }
 0x772   :  { %v5814_v44 = vpop.f32.mrb[56].mxu1  ;;  %v2946_v24 = vcombine.high %v2944_v7, %v2944_v7  ;;  %v2960_v49 = vrot.slane %v2944_v7, %v5090_v9  ;;  %v5824_v58 = vrot.slane %v3344_v38, %v5090_v9  ;;  %v2993_v7 = vrot.slane %v2979_v39, %v5090_v9 }
 0x773   :  { %v4579_v50 = vpop.f32.mrb[57].mxu1  ;;  %v2967_v11 = vrot.slane %v2945_v48, %v5090_v9  ;;  %v2975_v37 = vcombine.high %v2953_v18, %v2953_v18  ;;  %v5828_v20 = vcombine.low %v2929_v12, %v2953_v18  ;;  %v5832_v45 = vrot.slane %v4321_v15, %v5090_v9 }
 0x774   :  { %v2558_v54 = vpop.f32.mrb[58].mxu1  ;;  %v2974_v55 = vrot.slane %v2946_v24, %v5090_v9  ;;  %v2976_v28 = vcombine.high %v2960_v49, %v2960_v49  ;;  %v3002_v38 = vrot.slane %v2986_v25, %v5090_v9  ;;  %v2995_v24 = vcombine.high %v2993_v7, %v2993_v7 }
 0x775   :  { %v4580_v1 = vpop.f32.mrb[59].mxu1  ;;  %v2977_v50 = vcombine.high %v2967_v11, %v2967_v11  ;;  %v5837_v52 = vcombine.low %v2967_v11, %v2975_v37  ;;  %v3009_v12 = vrot.slane %v2993_v7, %v5090_v9  ;;  %v3016_v39 = vrot.slane %v2994_v56, %v5090_v9 }
 0x776   :  { %v2978_v54 = vcombine.high %v2974_v55, %v2974_v55  ;;  %v5839_v0 = vcombine.low %v2974_v55, %v2976_v28  ;;  %v3024_v18 = vcombine.high %v3002_v38, %v3002_v38  ;;  %v3023_v15 = vrot.slane %v2995_v24, %v5090_v9 }
 0x777   :  { %v3028_v27 = vcombine.high %v2570_v19, %v2570_v19  ;;  %v3035_v25 = vrot.slane %v2570_v19, %v5090_v9  ;;  %v5847_v13 = vcombine.low %v2977_v50, %v2960_v49  ;;  %v3025_v11 = vcombine.high %v3009_v12, %v3009_v12 }
 0x778   :  { %v5844_v1 = vcombine.low %v2978_v54, %v3002_v38  ;;  %v3026_v37 = vcombine.high %v3016_v39, %v3016_v39  ;;  %v3504_v48 = vrot.slane %v3497_v4, %v5090_v9  ;;  %v5850_v55 = vcombine.low %v3016_v39, %v3024_v18 }
 0x779   :  { %v3027_v28 = vcombine.high %v3023_v15, %v3023_v15  ;;  %v3042_v7 = vrot.slane %v3028_v27, %v5090_v9  ;;  %v3043_v56 = vcombine.high %v3035_v25, %v3035_v25  ;;  %v3051_v54 = vrot.slane %v3035_v25, %v5090_v9 }
 0x77a   :  { %v5855_v38 = vcombine.low %v3026_v37, %v3009_v12  ;;  %v3881_v19 = vsel %vm3869_vm9, %v3504_v48, 0.0  ;;  %v5866_v12 = vsel %vm3838_vm10, %v3504_v48, -inf  ;;  %v3221_v25 = vrot.slane %v3199_v40, %v5090_v9 }
 0x77b   :  { %v3044_v49 = vcombine.high %v3042_v7, %v3042_v7  ;;  %v3058_v4 = vrot.slane %v3042_v7, %v5090_v9  ;;  %v3065_v50 = vrot.slane %v3043_v56, %v5090_v9  ;;  %v3907_v39 = vsel %vm3838_vm10, %v3881_v19, 0.0 }
 0x77c   :  { %v3073_v27 = vcombine.high %v3051_v54, %v3051_v54  ;;  %v5863_v18 = vcombine.low %v3027_v28, %v3051_v54  ;;  %3908 = vadd.xlane.f32.xlu0 %v3907_v39  ;;  %v5872_v37 = vcombine.low %v3023_v15, %v3025_v11  ;;  %v3228_v28 = vrot.slane %v4316_v8, %v5090_v9 }
 0x77d   :  { %v3072_v7 = vrot.slane %v3044_v49, %v5090_v9  ;;  %v3075_v24 = vcombine.high %v3065_v50, %v3065_v50  ;;  %v3074_v56 = vcombine.high %v3058_v4, %v3058_v4  ;;  %v3229_v54 = vcombine.low %v5705_v5, %v5709_v53 }
 0x77e   :  { %v3634_v48 = vrot.slane %v5863_v18, %v5090_v9  ;;  %v2571_v19 = vmul.f32 33.333332, %v5773_v22  ;;  %v5884_v40 = vcombine.low %v3065_v50, %v3073_v27  ;;  %v3230_v11 = vcombine.low %v3221_v25, %v3228_v28 }
 0x77f   :  { %v5886_v15 = vcombine.low %v3075_v24, %v3058_v4  ;;  %v3076_v49 = vcombine.high %v3072_v7, %v3072_v7  ;;  %v3237_v39 = vrot.slane %v3229_v54, %v5090_v9  ;;  %v3417_v57 = vrot.slane %v3395_v34, %v5090_v9 }
 0x780   :  { %v3077_v60 = vcombine.high %v2571_v19, %v2571_v19  ;;  %v3084_v30 = vrot.slane %v2571_v19, %v5090_v9  ;;  %v3244_v8 = vrot.slane %v3230_v11, %v5090_v9  ;;  %v3424_v5 = vrot.slane %v4324_v14, %v5090_v9 }
 0x781   :  { %v3425_v53 = vcombine.low %v5716_v42, %v5726_v62  ;;  %v2572_v22 = vmul.f32 33.333332, %v5788_v61  ;;  %v5902_v24 = vcombine.low %v3072_v7, %v3074_v56 }
 0x782   :  { %v3091_v4 = vrot.slane %v3077_v60, %v5090_v9  ;;  %v3092_v50 = vcombine.high %v3084_v30, %v3084_v30  ;;  %v3100_v27 = vrot.slane %v3084_v30, %v5090_v9  ;;  %v3245_v34 = vcombine.low %v3237_v39, %v3244_v8 }
 0x783   :  { %v3426_v25 = vcombine.low %v3417_v57, %v3424_v5  ;;  %v3433_v28 = vrot.slane %v3425_v53, %v5090_v9  ;;  %v3126_v54 = vcombine.high %v2572_v22, %v2572_v22  ;;  %v3270_v39 = vrot.slane %v3248_v51, %v5090_v9 }
 0x784   :  { %v3093_v19 = vcombine.high %v3091_v4, %v3091_v4  ;;  %v3107_v63 = vrot.slane %v3091_v4, %v5090_v9  ;;  %v3114_v6 = vrot.slane %v3092_v50, %v5090_v9  ;;  %v3122_v14 = vcombine.high %v3100_v27, %v3100_v27 }
 0x785   :  { %v3875_v42 = vsel %vm3869_vm9, %v3245_v34, 0.0  ;;  %v5912_v62 = vsel %vm3827_vm11, %v3245_v34, -inf  ;;  %v5914_v60 = vcombine.low %v3076_v49, %v3100_v27  ;;  %v3440_v61 = vrot.slane %v3426_v25, %v5090_v9 }
 0x786   :  { %v3889_v7 = vsel %vm3827_vm11, %v3875_v42, 0.0  ;;  %v3121_v56 = vrot.slane %v3093_v19, %v5090_v9  ;;  %v3124_v11 = vcombine.high %v3114_v6, %v3114_v6  ;;  %v3123_v30 = vcombine.high %v3107_v63, %v3107_v63 }
 0x787   :  { %3890 = vadd.xlane.f32.xlu1 %v3889_v7  ;;  %v3683_v57 = vrot.slane %v5914_v60, %v5090_v9  ;;  %v3441_v8 = vcombine.low %v3433_v28, %v3440_v61  ;;  %v3133_v49 = vrot.slane %v2572_v22, %v5090_v9  ;;  %v5926_v5 = vcombine.low %v3114_v6, %v3122_v14 }
 0x788   :  { %v5928_v53 = vcombine.low %v3124_v11, %v3107_v63  ;;  %v3125_v4 = vcombine.high %v3121_v56, %v3121_v56  ;;  %v3140_v50 = vrot.slane %v3126_v54, %v5090_v9  ;;  %v6253_v63 = vcombine.high %v5719_v31, %v5723_v21 }
 0x789   :  { %v5932_v27 = vsel %vm3827_vm11, %v3441_v8, -inf  ;;  %v3879_v51 = vsel %vm3869_vm9, %v3441_v8, 0.0  ;;  %v3141_v34 = vcombine.high %v3133_v49, %v3133_v49  ;;  %v3149_v25 = vrot.slane %v3133_v49, %v5090_v9 }
 0x78a   :  { %v3901_v28 = vsel %vm3827_vm11, %v3879_v51, 0.0  ;;  %v3142_v19 = vcombine.high %v3140_v50, %v3140_v50  ;;  %v3156_v22 = vrot.slane %v3140_v50, %v5090_v9  ;;  %v3277_v6 = vrot.slane %v6253_v63, %v5090_v9 }
 0x78b   :  { %3902 = vadd.xlane.f32.xlu0 %v3901_v28  ;;  %v3163_v54 = vrot.slane %v3141_v34, %v5090_v9  ;;  %v3171_v14 = vcombine.high %v3149_v25, %v3149_v25  ;;  %v5944_v42 = vcombine.low %v3125_v4, %v3149_v25  ;;  %v3278_v61 = vcombine.low %v5735_v32, %v5740_v16 }
 0x78c   :  { %v3170_v7 = vrot.slane %v3142_v19, %v5090_v9  ;;  %v3172_v11 = vcombine.high %v3156_v22, %v3156_v22  ;;  %v3279_v8 = vcombine.low %v3270_v39, %v3277_v6  ;;  %v2573_v49 = vmul.f32 33.333332, %v5814_v44 }
 0x78d   :  { %v5950_v50 = vcombine.low %v3121_v56, %v3123_v30  ;;  %v3173_v51 = vcombine.high %v3163_v54, %v3163_v54  ;;  %v3732_v31 = vrot.slane %v5944_v42, %v5090_v9  ;;  %v5954_v21 = vcombine.low %v3163_v54, %v3171_v14 }
 0x78e   :  { %v3286_v4 = vrot.slane %v3278_v61, %v5090_v9  ;;  %v3293_v34 = vrot.slane %v3279_v8, %v5090_v9  ;;  %v3174_v25 = vcombine.high %v3170_v7, %v3170_v7  ;;  %v3181_v32 = vrot.slane %v2573_v49, %v5090_v9 }
 0x78f   :  { %v5959_v16 = vcombine.low %v3170_v7, %v3172_v11  ;;  %v6254_v44 = vcombine.low %v5745_v47, %v5750_v43  ;;  %v6255_v39 = vcombine.high %v5745_v47, %v5750_v43  ;;  %v3474_v28 = vcombine.low %v5759_v17, %v5776_v10 }
 0x790   :  { %v3294_v19 = vcombine.low %v3286_v4, %v3293_v34  ;;  %v3182_v63 = vcombine.high %v3181_v32, %v3181_v32  ;;  %v3189_v6 = vrot.slane %v3181_v32, %v5090_v9  ;;  %v6256_v54 = vcombine.low %v5762_v2, %v5765_v36 }
 0x791   :  { %v3466_v56 = vrot.slane %v6254_v44, %v5090_v9  ;;  %v3473_v30 = vrot.slane %v6255_v39, %v5090_v9  ;;  %v5976_v61 = vcombine.low %v3173_v51, %v3156_v22  ;;  %v6257_v47 = vcombine.high %v5762_v2, %v5765_v36 }
 0x792   :  { %v3319_v14 = vrot.slane %v6256_v54, %v5090_v9  ;;  %v3327_v17 = vcombine.low %v5783_v23, %v5791_v41  ;;  %v3876_v10 = vsel %vm3869_vm9, %v3294_v19, 0.0  ;;  %v5987_v11 = vsel %vm3827_vm11, %v3294_v19, -inf }
 0x793   :  { %v3475_v7 = vcombine.low %v3466_v56, %v3473_v30  ;;  %v3326_v43 = vrot.slane %v6257_v47, %v5090_v9  ;;  %v5989_v8 = vcombine.low %v3174_v25, %v3189_v6  ;;  %v3482_v22 = vrot.slane %v3474_v28, %v5090_v9 }
 0x794   :  { %v3892_v49 = vsel %vm3827_vm11, %v3876_v10, 0.0  ;;  %v5994_v51 = vrot.slane %v3182_v63, %v5090_v9  ;;  %v3335_v23 = vrot.slane %v3327_v17, %v5090_v9  ;;  %v3613_v41 = vrot.slane %v5850_v55, %v5090_v9 }
 0x795   :  { %v3489_v2 = vrot.slane %v3475_v7, %v5090_v9  ;;  %v3328_v36 = vcombine.low %v3319_v14, %v3326_v43  ;;  %3893 = vadd.xlane.f32.xlu0 %v3892_v49  ;;  %v3620_v4 = vrot.slane %v5855_v38, %v5090_v9  ;;  %v3627_v34 = vrot.slane %v5872_v37, %v5090_v9 }
 0x796   :  { %v3515_v44 = vrot.slane %v5795_v59, %v5090_v9  ;;  %v3522_v56 = vrot.slane %v5797_v29, %v5090_v9  ;;  %v3529_v38 = vrot.slane %v5799_v26, %v5090_v9  ;;  %v3662_v37 = vrot.slane %v5884_v40, %v5090_v9 }
 0x797   :  { %v3490_v25 = vcombine.low %v3482_v22, %v3489_v2  ;;  %v3342_v32 = vrot.slane %v3328_v36, %v5090_v9  ;;  %v3635_v39 = vcombine.low %v3613_v41, %v3620_v4  ;;  %v3636_v55 = vcombine.low %v3627_v34, %v3634_v48 }
 0x798   :  { %v3537_v19 = vcombine.low %v3515_v44, %v3522_v56  ;;  %v6258_v26 = vrot.slane %v5828_v20, %v5090_v9  ;;  %v3669_v14 = vrot.slane %v5886_v15, %v5090_v9  ;;  %v3676_v20 = vrot.slane %v5902_v24, %v5090_v9 }
 0x799   :  { %v6018_v30 = vsel %vm3827_vm11, %v3490_v25, -inf  ;;  %v3880_v59 = vsel %vm3869_vm9, %v3490_v25, 0.0  ;;  %v3343_v28 = vcombine.low %v3335_v23, %v3342_v32  ;;  %v3643_v63 = vrot.slane %v3635_v39, %v5090_v9 }
 0x79a   :  { %v3904_v29 = vsel %vm3827_vm11, %v3880_v59, 0.0  ;;  %v3650_v18 = vrot.slane %v3636_v55, %v5090_v9  ;;  %v3538_v48 = vcombine.low %v3529_v38, %v6258_v26  ;;  %v3545_v54 = vrot.slane %v3537_v19, %v5090_v9 }
 0x79b   :  { %3905 = vadd.xlane.f32.xlu0 %v3904_v29  ;;  %v3877_v40 = vsel %vm3869_vm9, %v3343_v28, 0.0  ;;  %v3830_v6 = vsel %vm3827_vm11, %v3343_v28, -inf  ;;  %v3684_v10 = vcombine.low %v3662_v37, %v3669_v14  ;;  %v6259_v22 = vcombine.low %v5803_v46, %v5808_v35 }
 0x79c   :  { %v3895_v7 = vsel %vm3827_vm11, %v3877_v40, 0.0  ;;  %v3831_v47 = vmax.f32 %v5912_v62, %v3830_v6  ;;  %v3651_v43 = vcombine.low %v3643_v63, %v3650_v18  ;;  %v3552_v17 = vrot.slane %v3538_v48, %v5090_v9 }
 0x79d   :  { %v3368_v49 = vrot.slane %v6259_v22, %v5090_v9  ;;  %v6260_v15 = vcombine.high %v5803_v46, %v5808_v35  ;;  %v3685_v4 = vcombine.low %v3676_v20, %v3683_v57  ;;  %v3692_v34 = vrot.slane %v3684_v10, %v5090_v9 }
 0x79e   :  { %v3835_v36 = vmax.f32 %v3831_v47, %v5932_v27  ;;  %v6049_v62 = vsel %vm3827_vm11, %v3651_v43, -inf  ;;  %v3884_v23 = vsel %vm3870_vm12, %v3651_v43, 0.0  ;;  %v3553_v24 = vcombine.low %v3545_v54, %v3552_v17 }
 0x79f   :  { %v3375_v2 = vrot.slane %v6260_v15, %v5090_v9  ;;  %3896 = vadd.xlane.f32.xlu0 %v3895_v7  ;;  %v3916_v41 = vsel %vm3827_vm11, %v3884_v23, 0.0  ;;  %v3376_v46 = vcombine.low %v5824_v58, %v5832_v45  ;;  %v3699_v60 = vrot.slane %v3685_v4, %v5090_v9 }
 0x7a0   :  { %v3840_v35 = vmax.f32 %v3835_v36, %v5866_v12  ;;  %3917 = vadd.xlane.f32.xlu1 %v3916_v41  ;;  %v3848_v27 = vsel %vm3827_vm11, %v3553_v24, -inf  ;;  %v3882_v25 = vsel %vm3870_vm12, %v3553_v24, 0.0  ;;  %v3805_v58 = vrot.slane %v5994_v51, %v5090_v9 }
 0x7a1   :  { %v3377_v32 = vcombine.low %v3368_v49, %v3375_v2  ;;  %v3851_v44 = vmax.f32 %v3848_v27, %v6049_v62  ;;  %v3910_v56 = vsel %vm3827_vm11, %v3882_v25, 0.0  ;;  %v3384_v57 = vrot.slane %v3376_v46, %v5090_v9 }
 0x7a2   :  { %v3564_v45 = vrot.slane %v5837_v52, %v5090_v9  ;;  %v3571_v12 = vrot.slane %v5847_v13, %v5090_v9  ;;  %v3700_v55 = vcombine.low %v3692_v34, %v3699_v60  ;;  %v3578_v38 = vrot.slane %v5839_v0, %v5090_v9 }
 0x7a3   :  { %v3391_v39 = vrot.slane %v3377_v32, %v5090_v9  ;;  %3911 = vadd.xlane.f32.xlu0 %v3910_v56  ;;  %v3711_v37 = vrot.slane %v5926_v5, %v5090_v9  ;;  %v3718_v59 = vrot.slane %v5928_v53, %v5090_v9  ;;  %v3812_v51 = vrot.slane %v3805_v58, %v5090_v9 }
 0x7a4   :  { %v3586_v19 = vcombine.low %v3564_v45, %v3571_v12  ;;  %v3725_v52 = vrot.slane %v5950_v50, %v5090_v9  ;;  %v3852_v13 = vsel %vm3827_vm11, %v3700_v55, -inf  ;;  %v3885_v29 = vsel %vm3870_vm12, %v3700_v55, 0.0 }
 0x7a5   :  { %v3392_v28 = vcombine.low %v3384_v57, %v3391_v39  ;;  %v6261_v0 = vrot.slane %v5844_v1, %v5090_v9  ;;  %v3733_v5 = vcombine.low %v3711_v37, %v3718_v59  ;;  %v3919_v18 = vsel %vm3827_vm11, %v3885_v29, 0.0 }
 0x7a6   :  { %v3858_v48 = vsel %vm3838_vm10, %v3812_v51, -inf  ;;  %v3781_v50 = vrot.slane %v5989_v8, %v5090_v9  ;;  %3920 = vadd.xlane.f32.xlu1 %v3919_v18  ;;  %v3888_v1 = vsel %vm3870_vm12, %v3812_v51, 0.0  ;;  %v3594_v54 = vrot.slane %v3586_v19, %v5090_v9  ;;  %v4327_v51 = vld [vmem:[%s6187_s13] ss:$0 sm:$0xff] }
 0x7a7   :  { %v3587_v63 = vcombine.low %v3578_v38, %v6261_v0  ;;  %v3878_v53 = vsel %vm3869_vm9, %v3392_v28, 0.0  ;;  %v3832_v26 = vsel %vm3827_vm11, %v3392_v28, -inf  ;;  %v3734_v7 = vcombine.low %v3725_v52, %v3732_v31 }
 0x7a8   :  { %v3898_v40 = vsel %vm3827_vm11, %v3878_v53, 0.0  ;;  %v3833_v6 = vmax.f32 %v5987_v11, %v3832_v26  ;;  %v3760_v8 = vrot.slane %v5954_v21, %v5090_v9  ;;  %v3767_v11 = vrot.slane %v5976_v61, %v5090_v9 }
 0x7a9   :  { %3899 = vadd.xlane.f32.xlu0 %v3898_v40  ;;  %v3601_v14 = vrot.slane %v3587_v63, %v5090_v9  ;;  %v3774_v43 = vrot.slane %v5959_v16, %v5090_v9  ;;  %v3928_v17 = vsel %vm3838_vm10, %v3888_v1, 0.0  ;;  %v3741_v10 = vrot.slane %v3733_v5, %v5090_v9 }
 0x7aa   :  { %v3837_v47 = vmax.f32 %v3833_v6, %v6018_v30  ;;  %v3748_v22 = vrot.slane %v3734_v7, %v5090_v9  ;;  %3929 = vadd.xlane.f32.xlu1 %v3928_v17  ;;  %v3782_v31 = vcombine.low %v3760_v8, %v3767_v11  ;;  %v4704_v1 = vmov 1   ;;  %v4333_v7 = vld [vmem:[%s6188_s15] ss:$0 sm:$0xff] }
 0x7ab   :  { %v3602_v20 = vcombine.low %v3594_v54, %v3601_v14  ;;  %v3783_v30 = vcombine.low %v3774_v43, %v3781_v50 }
 0x7ac   :  { %v3841_v42 = vmax.f32 %v3840_v35, %v3837_v47  ;;  %v3749_v61 = vcombine.low %v3741_v10, %v3748_v22  ;;  %v3790_v23 = vrot.slane %v3782_v31, %v5090_v9 }
 0x7ad   :  { %v3849_v49 = vsel %vm3827_vm11, %v3602_v20, -inf  ;;  %v3883_v21 = vsel %vm3870_vm12, %v3602_v20, 0.0  ;;  %v3797_v24 = vrot.slane %v3783_v30, %v5090_v9 }
 0x7ae   :  { %v3842_v15 = vrot.slane %v3841_v42, 4  ;;  %v3853_v2 = vmax.f32 %v3849_v49, %v3852_v13  ;;  %v3913_v16 = vsel %vm3827_vm11, %v3883_v21, 0.0  ;;  %v3854_v36 = vsel %vm3827_vm11, %v3749_v61, -inf }
 0x7af   :  { %3914 = vadd.xlane.f32.xlu0 %v3913_v16  ;;  %v3886_v62 = vsel %vm3870_vm12, %v3749_v61, 0.0  ;;  %v3855_v41 = vmax.f32 %v3851_v44, %v3854_v36  ;;  %v3798_v34 = vcombine.low %v3790_v23, %v3797_v24  ;;  %v4109_v36 = vadd.s32 4294967288, %v5676_v3 }
 0x7b0   :  { %v3922_v4 = vsel %vm3827_vm11, %v3886_v62, 0.0  ;;  %v3843_v46 = vmax.f32 %v3841_v42, %v3842_v15  ;;  %v4116_v23 = vadd.s32 4294967280, %v5676_v3 }
 0x7b1   :  { %3923 = vadd.xlane.f32.xlu1 %v3922_v4  ;;  %v3859_v35 = vmax.f32 %v3855_v41, %v3858_v48  ;;  %v3856_v27 = vsel %vm3827_vm11, %v3798_v34, -inf  ;;  %v3887_v25 = vsel %vm3870_vm12, %v3798_v34, 0.0  ;;  %v4112_v41 = vsub.s32 %v4109_v36, %v6240_v33 }
 0x7b2   :  { %v3857_v32 = vmax.f32 %v3853_v2, %v3856_v27  ;;  %v3925_v56 = vsel %vm3827_vm11, %v3887_v25, 0.0  ;;  %v3844_v60 = vrot.slane %v3843_v46, 2  ;;  %v4123_v4 = vadd.s32 4294967272, %v5676_v3 }
 0x7b3   :  { %v4107_v34 = vsub.s32 %v5676_v3, %v6240_v33 }
 0x7b4   :  { %v3860_v57 = vmax.f32 %v3859_v35, %v3857_v32  ;;  %v3845_v9 = vmax.f32 %v3843_v46, %v3844_v60  ;;  %v4119_v35 = vsub.s32 %v4116_v23, %v6240_v33  ;;  %v4126_v32 = vsub.s32 %v4123_v4, %v6240_v33 }
 0x7b5   :  { %3926 = vadd.xlane.f32.xlu1 %v3925_v56  ;;  %v4130_v56 = vadd.s32 4294967264, %v5676_v3 }
 0x7b6   :  { %v3861_v39 = vrot.slane %v3860_v57, 4  ;;  %v3846_v45 = vrot.slane %v3845_v9, 1 }
 0x7b8   :  { %v3862_v44 = vmax.f32 %v3860_v57, %v3861_v39  ;;  %v3847_v38 = vmax.f32 %v3845_v9, %v3846_v45  ;;  %v4137_v57 = vadd.s32 4294967256, %v5676_v3 }
 0x7ba   :  { %v3863_v58 = vrot.slane %v3862_v44, 2 }
 0x7bc   :  { %v3864_v12 = vmax.f32 %v3862_v44, %v3863_v58 }
 0x7be   :  { %v3865_v55 = vrot.slane %v3864_v12, 1 }
 0x7c0   :  { %v3866_v37 = vmax.f32 %v3864_v12, %v3865_v55  ;;  %v4133_v12 = vsub.s32 %v4130_v56, %v6240_v33 }
 0x7c2   :  { %v4088_v59 = vsel %vm2467_vm8, %v3866_v37, %v3847_v38 }
 0x7c3   :  { %v6132_v28 = vsel %vm3827_vm11, %v4088_v59, 0.0  ;;  %v4140_v59 = vsub.s32 %v4137_v57, %v6240_v33 }
 0x7df   :  { %v4000_v19 = vpop.f32.mrb[52].mxu0 }
 0x7e0   :  { %v4001_v52 = vadd.f32 %v4327_v51, %v4000_v19  ;;  %v4587_v13 = vpop.f32.mrb[53].mxu0  ;;  %v4144_v19 = vadd.s32 4294967248, %v5676_v3 }
 0x7e1   :  { %v4003_v29 = vpop.f32.mrb[54].mxu0 }
 0x7e2   :  { %v4331_v0 = vmul.f32 -1.442695, %v4001_v52  ;;  %v4004_v63 = vadd.f32 %v4327_v51, %v4003_v29  ;;  %v4588_v5 = vpop.f32.mrb[55].mxu0 }
 0x7e4   :  { %4687 = vpow2.f32 %v4331_v0  ;;  %v4332_v18 = vmul.f32 -1.442695, %v4004_v63 }
 0x7e6   :  { %4689 = vpow2.f32 %v4332_v18  ;;  %v4147_v18 = vsub.s32 %v4144_v19, %v6240_v33 }
 0x7e7   :  { %v4080_v47 = vpop.f32.mrb[56].mxu0 }
 0x7e8   :  { %v4081_v8 = vadd.f32 %v4333_v7, %v4080_v47  ;;  %v4595_v11 = vpop.f32.mrb[57].mxu0 }
 0x7e9   :  { %v4083_v43 = vpop.f32.mrb[58].mxu0 }
 0x7ea   :  { %v4223_v17 = vsel %vm4204_vm13, %v4081_v8, 0.0  ;;  %v4596_v20 = vpop.f32.mrb[59].mxu0 }
 0x7eb   :  { %v4239_v10 = vsel %vm4235_vm14, %v4223_v17, 0.0 }
 0x7ec   :  { %4241 = vst [vmem:[%s6189_s16 + $0x8] sm:$0xff] %v4239_v10 }
 0x7ee   :  { %v4688_v53 = vpop.eup %4687 }
 0x7ef   :  { %v4013_v26 = vadd.f32 1.0, %v4688_v53 }
 0x7f0   :  { %v4690_v48 = vpop.eup %4689 }
 0x7f1   :  { %4691 = vrcp.f32 %v4013_v26  ;;  %v4014_v50 = vadd.f32 1.0, %v4690_v48 }
 0x7f3   :  { %4693 = vrcp.f32 %v4014_v50 }
 0x7fb   :  { %v4692_v40 = vpop.eup %4691 }
 0x7fc   :  { %4189 = vperm.xlu0 %4608, %v4692_v40   ;;  %v4020_v6 = vcombine.high %v4692_v40, %v4692_v40 }
 0x7fd   :  { %v4694_v54 = vpop.eup %4693 }
 0x7fe   :  { %4192 = vperm.xlu1 %4609, %v4020_v6   ;;  %v4022_v14 = vcombine.high %v4694_v54, %v4694_v54 }
 0x800   :  { %4611 = vset.pattern.permute.xlu0 %v4704_v1 }
 0x802   :  { %4610 = vset.pattern.permute.xlu1 %v4704_v1 }
 0x803   :  { %4207 = vperm.xlu1 %4610, %v4694_v54  }
 0x807   :  { %4210 = vperm.xlu1 %4610, %v4022_v14  }
 0x809   :  { %v6145_v22 = vpop.xlane.xlu0 %3908 }
 0x80a   :  { %v4148_v3 = vrot.slane %v6145_v22, %v4147_v18 }
 0x814   :  { %v3891_v49 = vpop.xlane.xlu1 %3890 }
 0x815   :  { %v4108_v58 = vrot.slane %v3891_v49, %v4107_v34 }
 0x818   :  { %v3903_v42 = vpop.xlane.xlu0 %3902 }
 0x819   :  { %v4134_v5 = vrot.slane %v3903_v42, %v4133_v12 }
 0x822   :  { %v3894_v31 = vpop.xlane.xlu0 %3893 }
 0x823   :  { %v4113_v60 = vrot.slane %v3894_v31, %v4112_v41 }
 0x825   :  { %v4115_v37 = vsel %vm4114_vm15, %v4113_v60, %v4108_v58 }
 0x828   :  { %v3906_v30 = vpop.xlane.xlu0 %3905 }
 0x829   :  { %v4141_v48 = vrot.slane %v3906_v30, %v4140_v59 }
 0x82c   :  { %v3897_v21 = vpop.xlane.xlu0 %3896 }
 0x82d   :  { %v3918_v61 = vpop.xlane.xlu1 %3917  ;;  %v4120_v9 = vrot.slane %v3897_v21, %v4119_v35 }
 0x82e   :  { %v4163_v44 = vrot.slane %v3918_v61, %v4119_v35 }
 0x82f   :  { %v4122_v52 = vsel %vm4121_vm0, %v4120_v9, %v4115_v37 }
 0x830   :  { %v3912_v15 = vpop.xlane.xlu0 %3911 }
 0x831   :  { %v4154_v25 = vrot.slane %v3912_v15, %v4107_v34 }
 0x833   :  { %v3921_v2 = vpop.xlane.xlu1 %3920 }
 0x834   :  { %v4168_v51 = vrot.slane %v3921_v2, %v4126_v32 }
 0x836   :  { %v3900_v16 = vpop.xlane.xlu0 %3899 }
 0x837   :  { %v3930_v62 = vpop.xlane.xlu1 %3929  ;;  %v4127_v45 = vrot.slane %v3900_v16, %v4126_v32 }
 0x838   :  { %v4183_v40 = vrot.slane %v3930_v62, %v4147_v18 }
 0x839   :  { %v4129_v29 = vsel %vm4128_vm1, %v4127_v45, %v4122_v52 }
 0x83a   :  { %v4136_v53 = vsel %vm4135_vm2, %v4134_v5, %v4129_v29 }
 0x83b   :  { %v4143_v6 = vsel %vm4142_vm3, %v4141_v48, %v4136_v53 }
 0x83c   :  { %v3915_v24 = vpop.xlane.xlu0 %3914  ;;  %v4150_v47 = vsel %vm4149_vm4, %v4148_v3, %v4143_v6 }
 0x83d   :  { %v4158_v46 = vrot.slane %v3915_v24, %v4112_v41 }
 0x83e   :  { %v3924_v27 = vpop.xlane.xlu1 %3923 }
 0x83f   :  { %v4159_v39 = vsel %vm4114_vm15, %v4158_v46, %v4154_v25  ;;  %v4173_v13 = vrot.slane %v3924_v27, %v4133_v12 }
 0x840   :  { %v4164_v55 = vsel %vm4121_vm0, %v4163_v44, %v4159_v39 }
 0x841   :  { %v4169_v0 = vsel %vm4128_vm1, %v4168_v51, %v4164_v55 }
 0x842   :  { %v3927_v38 = vpop.xlane.xlu1 %3926  ;;  %v4174_v26 = vsel %vm4135_vm2, %v4173_v13, %v4169_v0 }
 0x843   :  { %v4178_v63 = vrot.slane %v3927_v38, %v4140_v59 }
 0x845   :  { %v4179_v50 = vsel %vm4142_vm3, %v4178_v63, %v4174_v26 }
 0x846   :  { %v4184_v14 = vsel %vm4149_vm4, %v4183_v40, %v4179_v50 }
 0x847   :  { %v4185_v11 = vsel %vm2467_vm8, %v4184_v14, %v4150_v47 }
 0x848   :  { %v4187_v17 = vsel %vm2154_vm6, %v4185_v11, 0.0 }
 0x849   :  { %v4225_v42 = vrot.slane %v4187_v17, 6 }
 0x84b   :  { %v4234_v15 = vsel %vm4233_vm5, %v6132_v28, %v4225_v42 }
 0x87b   :  { %v4190_v1 = vpop.permute.xlu0 %4189 }
 0x87c   :  { %v4197_v8 = vrot.slane %v4190_v1, %v4107_v34 }
 0x87d   :  { %v4193_v54 = vpop.permute.xlu1 %4192 }
 0x87e   :  { %v4201_v7 = vrot.slane %v4193_v54, %v4107_v34 }
 0x880   :  { %v4202_v33 = vsel %vm2467_vm8, %v4201_v7, %v4197_v8 }
 0x881   :  { %v4205_v20 = vsel %vm4204_vm13, %v4202_v33, 0.0 }
 0x882   :  { %v4208_v43 = vpop.permute.xlu1 %4207  ;;  %v4228_v49 = vrot.slane %v4205_v20, 4 }
 0x883   :  { %v4215_v31 = vrot.slane %v4208_v43, %v4107_v34 }
 0x884   :  { %v4236_v2 = vsel %vm4235_vm14, %v4234_v15, %v4228_v49 }
 0x886   :  { %v4211_v10 = vpop.permute.xlu1 %4210 }
 0x887   :  { %v4219_v30 = vrot.slane %v4211_v10, %v4107_v34 }
 0x889   :  { %v4220_v22 = vsel %vm2467_vm8, %v4219_v30, %v4215_v31 }
 0x88a   :  { %v4222_v21 = vsel %vm4204_vm13, %v4220_v22, 0.0 }
 0x88b   :  { %v4231_v61 = vrot.slane %v4222_v21, 2 }
 0x88d   :  { %v4238_v16 = vsel %vm4237_vm7, %v4236_v2, %v4231_v61 }
 0x88e   :  { %4240 = vst [vmem:[%s6189_s16] sm:$0xff] %v4238_v16 }

</bundles_post_ra>
